<compile_context>
chip_gen: v5e
topology: v5e:2x2
jax: 0.10.0
libtpu: 0.0.40
codegen_flags: <defaults>
</compile_context>

<pallas_src>
import functools

import numpy as np
import jax
import jax.numpy as jnp
from jax.experimental import pallas as pl
from jax.experimental.pallas import tpu as pltpu

EPS = 1e-9
TEMP = 0.66
NEG_INF = -1e30


def _ceil_to(x, m):
    return -(-x // m) * m


# --------------------------------------------------------------------------------------
# Fused DecoderB kernel
# --------------------------------------------------------------------------------------
def _decoder_b_kernel(z_ref, w1_ref, b1_ref, w2_ref, b2_ref, w3_ref, b3_ref,
                      s_ref, tgt_ref, pred_ref, loss_ref, *, out_dim):
    # ---- fused MLP: relu(z@W1+b1) -> relu(@W2+b2) -> @W3+b3  (bf16 MXU, f32 accumulate) ----
    h = jnp.dot(z_ref[...], w1_ref[...], preferred_element_type=jnp.float32) + b1_ref[...]
    h = jnp.maximum(h, 0.0)
    h = jnp.dot(h.astype(jnp.bfloat16), w2_ref[...],
                preferred_element_type=jnp.float32) + b2_ref[...]
    h = jnp.maximum(h, 0.0)
    logits = jnp.dot(h.astype(jnp.bfloat16), w3_ref[...],
                     preferred_element_type=jnp.float32) + b3_ref[...]

    col = jax.lax.broadcasted_iota(jnp.int32, logits.shape, 1)
    valid = col < out_dim

    # ---- per-attribute-chunk log_softmax, single exp pass ----
    # Full-vector log_softmax + the +EPS shifts are per-row constants inside each chunk and
    # therefore cancel in the chunk-wise log_softmax; only the chunk normalization is computed.
    x = jnp.where(valid, logits, NEG_INF)            # padded logits are exactly 0; mask them out
    m = jnp.max(x, axis=-1, keepdims=True)           # per-row global max (shift cancels exactly)
    e = jnp.exp(x - m)                               # padded lanes underflow to exactly 0
    # per-lane chunk denominator: S[j,k] = 1 iff columns j,k belong to the same attribute chunk
    denom = jnp.dot(e, s_ref[...], preferred_element_type=jnp.float32)
    y = jnp.where(valid,
                  (x - m) - jnp.log(jnp.where(valid, denom, 1.0)),
                  0.0)

    pred_ref[...] = y
    # p.loss: sum_i -(target_i * y_pred_i).sum(-1); targets are zero in the padded columns
    loss_ref[...] = -jnp.sum(tgt_ref[...].astype(jnp.float32) * y, axis=-1, keepdims=True)


def decoder_b_forward(params, attr_zShareds, label_zShared, attributes, poe=False):
    """Deterministic value path of DecoderB.forward + the p.loss term.

    attr_zShareds: list of (S, B, d_i) concrete latents; label_zShared: (S, B, d_label);
    attributes:    list of (B, d_i) targets (same chunk widths as zSharedAttr_dim).
    Returns (pred_labels: (B, sum(d_i)) chunk-wise log-probs, loss: (B,)).
    """
    latents = []
    for z in attr_zShareds:
        latents.append(jnp.power(z + EPS, 1.0 / 3) if poe else z)
    latents.append(jnp.power(label_zShared + EPS, 1.0 / 4) if poe else label_zShared)
    z = jnp.concatenate(latents, axis=-1)
    z = z.reshape(-1, z.shape[-1]).astype(jnp.float32)   # squeeze the num_samples axis

    tgt = jnp.concatenate(attributes, axis=-1).astype(jnp.float32)

    B, in_dim = z.shape
    hid = params["w1"].shape[1]
    out_dim = params["w3"].shape[1]

    # ---- padded shapes ----
    InP = _ceil_to(in_dim, 32)          # small-K pad: avoid multiplying 110 zero lanes on MXU
    OutP = _ceil_to(out_dim, 128)
    if B <= 16:
        tm = _ceil_to(B, 8)             # single small tile
    else:
        # >= 2 grid steps (v7x megacore), tiles up to 512 rows (amortize per-step overhead)
        tm = min(512, _ceil_to(-(-B // 2), 8))
    Bp = _ceil_to(B, tm)

    # batch-proportional inputs in bf16 (z is consumed in bf16; one-hot targets are exact)
    z_p = jnp.pad(z, ((0, Bp - B), (0, InP - in_dim))).astype(jnp.bfloat16)
    tgt_p = jnp.pad(tgt, ((0, Bp - B), (0, OutP - out_dim))).astype(jnp.bfloat16)

    w1 = jnp.pad(params["w1"], ((0, InP - in_dim), (0, 0))).astype(jnp.bfloat16)
    b1 = params["b1"].reshape(1, hid).astype(jnp.float32)
    w2 = params["w2"].astype(jnp.bfloat16)
    b2 = params["b2"].reshape(1, hid).astype(jnp.float32)
    w3 = jnp.pad(params["w3"], ((0, 0), (0, OutP - out_dim))).astype(jnp.bfloat16)
    b3 = jnp.pad(params["b3"], (0, OutP - out_dim)).reshape(1, OutP).astype(jnp.float32)

    # static same-chunk indicator matrix (0/1), padded columns belong to no chunk
    cid = np.full((OutP,), -1, np.int32)
    start = 0
    for i, a in enumerate(attributes):
        d = int(a.shape[-1])
        cid[start:start + d] = i
        start += d
    S = ((cid[:, None] == cid[None, :]) & (cid[:, None] >= 0)).astype(np.float32)
    S = jnp.asarray(S)

    pred, loss = pl.pallas_call(
        functools.partial(_decoder_b_kernel, out_dim=out_dim),
        out_shape=(jax.ShapeDtypeStruct((Bp, OutP), jnp.float32),
                   jax.ShapeDtypeStruct((Bp, 1), jnp.float32)),
        grid_spec=pltpu.PrefetchScalarGridSpec(
            num_scalar_prefetch=0,
            grid=(Bp // tm,),
            in_specs=[
                pl.BlockSpec((tm, InP), lambda i: (i, 0)),     # z (batch-tiled, bf16)
                pl.BlockSpec((InP, hid), lambda i: (0, 0)),    # W1 (VMEM-resident)
                pl.BlockSpec((1, hid), lambda i: (0, 0)),      # b1
                pl.BlockSpec((hid, hid), lambda i: (0, 0)),    # W2
                pl.BlockSpec((1, hid), lambda i: (0, 0)),      # b2
                pl.BlockSpec((hid, OutP), lambda i: (0, 0)),   # W3
                pl.BlockSpec((1, OutP), lambda i: (0, 0)),     # b3
                pl.BlockSpec((OutP, OutP), lambda i: (0, 0)),  # same-chunk indicator S
                pl.BlockSpec((tm, OutP), lambda i: (i, 0)),    # targets (batch-tiled, bf16)
            ],
            out_specs=[
                pl.BlockSpec((tm, OutP), lambda i: (i, 0)),    # pred_labels (chunk log-probs)
                pl.BlockSpec((tm, 1), lambda i: (i, 0)),       # loss per row
            ],
        ),
        compiler_params=pltpu.CompilerParams(
            dimension_semantics=("parallel",),
        ),
    )(z_p, w1, b1, w2, b2, w3, b3, S, tgt_p)

    return pred[:B, :out_dim], loss[:B, 0]


# --------------------------------------------------------------------------------------
# Pure-JAX f32 reference (mirrors the PyTorch forward value path exactly)
# --------------------------------------------------------------------------------------
def decoder_b_reference(params, attr_zShareds, label_zShared, attributes, poe=False):
    latents = []
    for z in attr_zShareds:
        latents.append(jnp.power(z + EPS, 1.0 / 3) if poe else z)
    latents.append(jnp.power(label_zShared + EPS, 1.0 / 4) if poe else label_zShared)
    z = jnp.concatenate(latents, axis=-1).reshape(-1, sum(l.shape[-1] for l in latents))
    z = z.astype(jnp.float32)

    h = jnp.maximum(z @ params["w1"] + params["b1"], 0.0)
    h = jnp.maximum(h @ params["w2"] + params["b2"], 0.0)
    logits = h @ params["w3"] + params["b3"]
    y_full = jax.nn.log_softmax(logits + EPS, axis=-1)

    preds = []
    loss = jnp.zeros((z.shape[0],), jnp.float32)
    start = 0
    for a in attributes:
        d = int(a.shape[-1])
        yc = jax.nn.log_softmax(y_full[:, start:start + d] + EPS, axis=-1)
        preds.append(yc)
        loss = loss - (a.astype(jnp.float32) * yc).sum(-1)
        start += d
    return jnp.concatenate(preds, axis=-1), loss


# --------------------------------------------------------------------------------------
# Parameter construction (deterministic, mirrors DecoderB.__init__ structure)
# --------------------------------------------------------------------------------------
def build_decoder_params(key, zSharedAttr_dim, zSharedLabel_dim, hidden=512):
    in_dim = sum(zSharedAttr_dim) + zSharedLabel_dim
    out_dim = sum(zSharedAttr_dim)
    k1, k2, k3 = jax.random.split(key, 3)

    def kaiming(k, fan_in, shape):
        return jax.random.normal(k, shape, jnp.float32) * jnp.sqrt(2.0 / fan_in)

    return dict(
        w1=kaiming(k1, in_dim, (in_dim, hidden)), b1=jnp.zeros((hidden,), jnp.float32),
        w2=kaiming(k2, hidden, (hidden, hidden)), b2=jnp.zeros((hidden,), jnp.float32),
        w3=kaiming(k3, hidden, (hidden, out_dim)), b3=jnp.zeros((out_dim,), jnp.float32),
    )


# --------------------------------------------------------------------------------------
if __name__ == "__main__":
    batch = 2
    zSharedAttr_dim = [4, 4, 5]   # attribute chunk widths (sum = 13)
    zSharedLabel_dim = 5

    params = build_decoder_params(jax.random.PRNGKey(42), zSharedAttr_dim, zSharedLabel_dim)

    key = jax.random.PRNGKey(0)
    n_attr = len(zSharedAttr_dim)
    keys = jax.random.split(key, 2 * n_attr + 2)

    # concrete (relaxed one-hot) latents, shape (num_samples=1, batch, d) like the module
    attr_zShareds = [
        jax.nn.softmax(jax.random.normal(keys[i], (1, batch, d), jnp.float32) / TEMP, axis=-1)
        for i, d in enumerate(zSharedAttr_dim)
    ]
    label_zShared = jax.nn.softmax(
        jax.random.normal(keys[n_attr], (1, batch, zSharedLabel_dim), jnp.float32) / TEMP,
        axis=-1)

    # target attributes: one-hot per attribute group, shape (batch, d_i)
    attributes = []
    for i, d in enumerate(zSharedAttr_dim):
        idx = jax.random.randint(keys[n_attr + 1 + i], (batch,), 0, d)
        attributes.append(jax.nn.one_hot(idx, d, dtype=jnp.float32))

    pred_labels, loss = decoder_b_forward(params, attr_zShareds, label_zShared,
                                          attributes, poe=False)
    pred_labels = jax.block_until_ready(pred_labels)
    loss = jax.block_until_ready(loss)

    # structural checks
    assert pred_labels.shape == (batch, sum(zSharedAttr_dim))
    assert loss.shape == (batch,)
    assert bool(jnp.all(jnp.isfinite(pred_labels)))
    assert bool(jnp.all(jnp.isfinite(loss)))
    assert bool(jnp.all(pred_labels <= 0.0))          # log-probabilities
    assert bool(jnp.all(loss >= 0.0))                 # -sum(one_hot * log_prob) >= 0
    start = 0
    for d in zSharedAttr_dim:                         # each chunk is a normalized log-softmax
        s = jnp.sum(jnp.exp(pred_labels[:, start:start + d]), axis=-1)
        assert bool(jnp.all(jnp.abs(s - 1.0) < 1e-3))
        start += d

    # tolerance check against the f32 reference (bf16 MXU introduces ~1e-2 absolute error)
    ref_pred, ref_loss = decoder_b_reference(params, attr_zShareds, label_zShared,
                                             attributes, poe=False)
    assert bool(jnp.max(jnp.abs(pred_labels - ref_pred)) < 5e-2)
    assert bool(jnp.max(jnp.abs(loss - ref_loss)) < 1e-1)

    print("KERNEL_OK")
</pallas_src>

<mosaic_0001>
module attributes {stable_mosaic.version = 11 : i64} {
  func.func @_decoder_b_kernel(%arg0: i32, %arg1: memref<8x32xbf16, #tpu.memory_space<vmem>>, %arg2: memref<32x512xbf16, #tpu.memory_space<vmem>>, %arg3: memref<1x512xf32, #tpu.memory_space<vmem>>, %arg4: memref<512x512xbf16, #tpu.memory_space<vmem>>, %arg5: memref<1x512xf32, #tpu.memory_space<vmem>>, %arg6: memref<512x128xbf16, #tpu.memory_space<vmem>>, %arg7: memref<1x128xf32, #tpu.memory_space<vmem>>, %arg8: memref<128x128xf32, #tpu.memory_space<vmem>>, %arg9: memref<8x128xbf16, #tpu.memory_space<vmem>>, %arg10: memref<8x128xf32, #tpu.memory_space<vmem>>, %arg11: memref<8x1xf32, #tpu.memory_space<vmem>>) attributes {dimension_semantics = [#tpu.dimension_semantics<parallel>], iteration_bounds = array<i64: 1>, scalar_prefetch = 0 : i64, scratch_operands = 0 : i64, tpu.core_type = #tpu.core_type<tc>, window_params = [{transform_indices = @transform_0, window_bounds = array<i64: 8, 32>}, {pipeline_mode = #tpu.pipeline_mode<synchronous>, transform_indices = @transform_1, window_bounds = array<i64: 32, 512>}, {pipeline_mode = #tpu.pipeline_mode<synchronous>, transform_indices = @transform_2, window_bounds = array<i64: 1, 512>}, {pipeline_mode = #tpu.pipeline_mode<synchronous>, transform_indices = @transform_3, window_bounds = array<i64: 512, 512>}, {pipeline_mode = #tpu.pipeline_mode<synchronous>, transform_indices = @transform_4, window_bounds = array<i64: 1, 512>}, {pipeline_mode = #tpu.pipeline_mode<synchronous>, transform_indices = @transform_5, window_bounds = array<i64: 512, 128>}, {pipeline_mode = #tpu.pipeline_mode<synchronous>, transform_indices = @transform_6, window_bounds = array<i64: 1, 128>}, {pipeline_mode = #tpu.pipeline_mode<synchronous>, transform_indices = @transform_7, window_bounds = array<i64: 128, 128>}, {transform_indices = @transform_8, window_bounds = array<i64: 8, 128>}, {transform_indices = @transform_9, window_bounds = array<i64: 8, 128>}, {transform_indices = @transform_10, window_bounds = array<i64: 8, 1>}]} {
    %c0 = arith.constant 0 : index
    %c0_0 = arith.constant 0 : index
    %0 = vector.load %arg1[%c0, %c0_0] : memref<8x32xbf16, #tpu.memory_space<vmem>>, vector<8x32xbf16>
    %c0_1 = arith.constant 0 : index
    %c0_2 = arith.constant 0 : index
    %1 = vector.load %arg2[%c0_1, %c0_2] : memref<32x512xbf16, #tpu.memory_space<vmem>>, vector<32x512xbf16>
    %cst = arith.constant dense<0.000000e+00> : vector<8x512xf32>
    %2 = tpu.matmul %0, %1, %cst {dimension_numbers = #tpu.dot_dimension_numbers<[1], [0], [0], [1], [0, 0, 1, 1], [], []>} : vector<8x32xbf16>, vector<32x512xbf16>, vector<8x512xf32> -> vector<8x512xf32>
    %c0_3 = arith.constant 0 : index
    %c0_4 = arith.constant 0 : index
    %3 = vector.load %arg3[%c0_3, %c0_4] : memref<1x512xf32, #tpu.memory_space<vmem>>, vector<1x512xf32>
    %4 = vector.broadcast %3 : vector<1x512xf32> to vector<8x512xf32>
    %5 = arith.addf %2, %4 : vector<8x512xf32>
    %cst_5 = arith.constant 0.000000e+00 : f32
    %6 = vector.broadcast %cst_5 : f32 to vector<8x512xf32>
    %7 = arith.maximumf %5, %6 : vector<8x512xf32>
    %8 = arith.truncf %7 : vector<8x512xf32> to vector<8x512xbf16>
    %c0_6 = arith.constant 0 : index
    %c0_7 = arith.constant 0 : index
    %9 = vector.load %arg4[%c0_6, %c0_7] : memref<512x512xbf16, #tpu.memory_space<vmem>>, vector<512x512xbf16>
    %cst_8 = arith.constant dense<0.000000e+00> : vector<8x512xf32>
    %10 = tpu.matmul %8, %9, %cst_8 {dimension_numbers = #tpu.dot_dimension_numbers<[1], [0], [0], [1], [0, 0, 1, 1], [], []>} : vector<8x512xbf16>, vector<512x512xbf16>, vector<8x512xf32> -> vector<8x512xf32>
    %c0_9 = arith.constant 0 : index
    %c0_10 = arith.constant 0 : index
    %11 = vector.load %arg5[%c0_9, %c0_10] : memref<1x512xf32, #tpu.memory_space<vmem>>, vector<1x512xf32>
    %12 = vector.broadcast %11 : vector<1x512xf32> to vector<8x512xf32>
    %13 = arith.addf %10, %12 : vector<8x512xf32>
    %cst_11 = arith.constant 0.000000e+00 : f32
    %14 = vector.broadcast %cst_11 : f32 to vector<8x512xf32>
    %15 = arith.maximumf %13, %14 : vector<8x512xf32>
    %16 = arith.truncf %15 : vector<8x512xf32> to vector<8x512xbf16>
    %c0_12 = arith.constant 0 : index
    %c0_13 = arith.constant 0 : index
    %17 = vector.load %arg6[%c0_12, %c0_13] : memref<512x128xbf16, #tpu.memory_space<vmem>>, vector<512x128xbf16>
    %cst_14 = arith.constant dense<0.000000e+00> : vector<8x128xf32>
    %18 = tpu.matmul %16, %17, %cst_14 {dimension_numbers = #tpu.dot_dimension_numbers<[1], [0], [0], [1], [0, 0, 1, 1], [], []>} : vector<8x512xbf16>, vector<512x128xbf16>, vector<8x128xf32> -> vector<8x128xf32>
    %c0_15 = arith.constant 0 : index
    %c0_16 = arith.constant 0 : index
    %19 = vector.load %arg7[%c0_15, %c0_16] : memref<1x128xf32, #tpu.memory_space<vmem>>, vector<1x128xf32>
    %20 = vector.broadcast %19 : vector<1x128xf32> to vector<8x128xf32>
    %21 = arith.addf %18, %20 : vector<8x128xf32>
    %22 = tpu.iota {dimensions = array<i32: 1>} : vector<8x128xi32>
    %c13_i32 = arith.constant 13 : i32
    %23 = vector.broadcast %c13_i32 : i32 to vector<8x128xi32>
    %24 = arith.cmpi slt, %22, %23 : vector<8x128xi32>
    %cst_17 = arith.constant -1.000000e+30 : f32
    %25 = vector.broadcast %cst_17 : f32 to vector<8x128xf32>
    %26 = arith.select %24, %21, %25 : vector<8x128xi1>, vector<8x128xf32>
    %cst_18 = arith.constant dense<0xFF800000> : vector<8xf32>
    %27 = vector.multi_reduction <maximumf>, %26, %cst_18 [1] : vector<8x128xf32> to vector<8xf32>
    %28 = vector.shape_cast %27 : vector<8xf32> to vector<8x1xf32>
    %29 = vector.broadcast %28 : vector<8x1xf32> to vector<8x128xf32>
    %30 = arith.subf %26, %29 : vector<8x128xf32>
    %31 = math.exp %30 : vector<8x128xf32>
    %c0_19 = arith.constant 0 : index
    %c0_20 = arith.constant 0 : index
    %32 = vector.load %arg8[%c0_19, %c0_20] : memref<128x128xf32, #tpu.memory_space<vmem>>, vector<128x128xf32>
    %cst_21 = arith.constant dense<0.000000e+00> : vector<8x128xf32>
    %33 = tpu.matmul %31, %32, %cst_21 {dimension_numbers = #tpu.dot_dimension_numbers<[1], [0], [0], [1], [0, 0, 1, 1], [], []>} : vector<8x128xf32>, vector<128x128xf32>, vector<8x128xf32> -> vector<8x128xf32>
    %34 = vector.broadcast %28 : vector<8x1xf32> to vector<8x128xf32>
    %35 = arith.subf %26, %34 : vector<8x128xf32>
    %cst_22 = arith.constant 1.000000e+00 : f32
    %36 = vector.broadcast %cst_22 : f32 to vector<8x128xf32>
    %37 = arith.select %24, %33, %36 : vector<8x128xi1>, vector<8x128xf32>
    %38 = math.log %37 : vector<8x128xf32>
    %39 = arith.subf %35, %38 : vector<8x128xf32>
    %cst_23 = arith.constant 0.000000e+00 : f32
    %40 = vector.broadcast %cst_23 : f32 to vector<8x128xf32>
    %41 = arith.select %24, %39, %40 : vector<8x128xi1>, vector<8x128xf32>
    %c0_24 = arith.constant 0 : index
    %c0_25 = arith.constant 0 : index
    %42 = vector.load %arg10[%c0_24, %c0_25] : memref<8x128xf32, #tpu.memory_space<vmem>>, vector<8x128xf32>
    tpu.vector_store %arg10[%c0_24, %c0_25], %41 {strides = array<i32>} : memref<8x128xf32, #tpu.memory_space<vmem>>, vector<8x128xf32>,
    %c0_26 = arith.constant 0 : index
    %c0_27 = arith.constant 0 : index
    %43 = vector.load %arg9[%c0_26, %c0_27] : memref<8x128xbf16, #tpu.memory_space<vmem>>, vector<8x128xbf16>
    %44 = arith.extf %43 : vector<8x128xbf16> to vector<8x128xf32>
    %45 = arith.mulf %44, %41 : vector<8x128xf32>
    %cst_28 = arith.constant dense<0.000000e+00> : vector<8xf32>
    %46 = vector.multi_reduction <add>, %45, %cst_28 [1] : vector<8x128xf32> to vector<8xf32>
    %47 = vector.shape_cast %46 : vector<8xf32> to vector<8x1xf32>
    %cst_29 = arith.constant 0.000000e+00 : f32
    %48 = vector.broadcast %cst_29 : f32 to vector<8x1xf32>
    %49 = arith.subf %48, %47 : vector<8x1xf32>
    %c0_30 = arith.constant 0 : index
    %c0_31 = arith.constant 0 : index
    %50 = vector.load %arg11[%c0_30, %c0_31] : memref<8x1xf32, #tpu.memory_space<vmem>>, vector<8x1xf32>
    tpu.vector_store %arg11[%c0_30, %c0_31], %49 {strides = array<i32>} : memref<8x1xf32, #tpu.memory_space<vmem>>, vector<8x1xf32>,
    return
  }
  func.func @transform_0(%arg0: i32) -> (i32, i32) {
    %c0_i32 = arith.constant 0 : i32
    %c0_i32_0 = arith.constant 0 : i32
    return %arg0, %c0_i32 : i32, i32
  }
  func.func @transform_1(%arg0: i32) -> (i32, i32) {
    %c0_i32 = arith.constant 0 : i32
    %c0_i32_0 = arith.constant 0 : i32
    %c0_i32_1 = arith.constant 0 : i32
    return %c0_i32, %c0_i32_0 : i32, i32
  }
  func.func @transform_2(%arg0: i32) -> (i32, i32) {
    %c0_i32 = arith.constant 0 : i32
    %c0_i32_0 = arith.constant 0 : i32
    %c0_i32_1 = arith.constant 0 : i32
    return %c0_i32, %c0_i32_0 : i32, i32
  }
  func.func @transform_3(%arg0: i32) -> (i32, i32) {
    %c0_i32 = arith.constant 0 : i32
    %c0_i32_0 = arith.constant 0 : i32
    %c0_i32_1 = arith.constant 0 : i32
    return %c0_i32, %c0_i32_0 : i32, i32
  }
  func.func @transform_4(%arg0: i32) -> (i32, i32) {
    %c0_i32 = arith.constant 0 : i32
    %c0_i32_0 = arith.constant 0 : i32
    %c0_i32_1 = arith.constant 0 : i32
    return %c0_i32, %c0_i32_0 : i32, i32
  }
  func.func @transform_5(%arg0: i32) -> (i32, i32) {
    %c0_i32 = arith.constant 0 : i32
    %c0_i32_0 = arith.constant 0 : i32
    %c0_i32_1 = arith.constant 0 : i32
    return %c0_i32, %c0_i32_0 : i32, i32
  }
  func.func @transform_6(%arg0: i32) -> (i32, i32) {
    %c0_i32 = arith.constant 0 : i32
    %c0_i32_0 = arith.constant 0 : i32
    %c0_i32_1 = arith.constant 0 : i32
    return %c0_i32, %c0_i32_0 : i32, i32
  }
  func.func @transform_7(%arg0: i32) -> (i32, i32) {
    %c0_i32 = arith.constant 0 : i32
    %c0_i32_0 = arith.constant 0 : i32
    %c0_i32_1 = arith.constant 0 : i32
    return %c0_i32, %c0_i32_0 : i32, i32
  }
  func.func @transform_8(%arg0: i32) -> (i32, i32) {
    %c0_i32 = arith.constant 0 : i32
    %c0_i32_0 = arith.constant 0 : i32
    return %arg0, %c0_i32 : i32, i32
  }
  func.func @transform_9(%arg0: i32) -> (i32, i32) {
    %c0_i32 = arith.constant 0 : i32
    %c0_i32_0 = arith.constant 0 : i32
    return %arg0, %c0_i32 : i32, i32
  }
  func.func @transform_10(%arg0: i32) -> (i32, i32) {
    %c0_i32 = arith.constant 0 : i32
    %c0_i32_0 = arith.constant 0 : i32
    return %arg0, %c0_i32 : i32, i32
  }
}

</mosaic_0001>

<bundles_post_ra>
// kernel: tpu_custom_call.1
= control target key start
LH: loop header
LB: loop body
LE: loop exit
PB: predicated region body
PF: predicated region fallthrough
CT: control target
= control target key end

     0   :  { %16 = vsyncpa [#allocation3], 0  ;;  %s2861_s0 = inlined_call_operand.hbm [shape: bf16[8,32], index: 0, kind: input, shape index: {}]   ;;  %s2862_s1 = inlined_call_operand.hbm [shape: bf16[32,512], index: 1, kind: input, shape index: {}]   ;;  %s2863_s2 = inlined_call_operand.hbm [shape: f32[1,512], index: 2, kind: input, shape index: {}]   ;;  %s2864_s3 = inlined_call_operand.hbm [shape: bf16[512,512], index: 3, kind: input, shape index: {}]   ;;  %s2865_s4 = inlined_call_operand.hbm [shape: f32[1,512], index: 4, kind: input, shape index: {}]   ;;  %s2866_s5 = inlined_call_operand.hbm [shape: bf16[512,128], index: 5, kind: input, shape index: {}]   ;;  %s2867_s6 = inlined_call_operand.vmem [shape: f32[1,128], index: 6, kind: input, shape index: {}]   ;;  %s2868_s7 = inlined_call_operand.hbm [shape: f32[128,128], index: 7, kind: input, shape index: {}]   ;;  %s2869_s8 = inlined_call_operand.vmem [shape: bf16[8,128], index: 8, kind: input, shape index: {}]   ;;  %s2870_s9 = inlined_call_operand.hbm [shape: f32[8,128], index: 9, kind: output, shape index: {0}]   ;;  %s2871_s10 = inlined_call_operand.vmem [shape: f32[8,1], index: 10, kind: output, shape index: {1}]  }
   0x1   :  { %17 = vsyncpa [#allocation6], 0 }
   0x2   :  { %18 = vsyncpa [#allocation9], 0 }
   0x3   :  { %19 = vsyncpa [#allocation12], 0  ;;  %s36_s15 = sshll.u32 %s2862_s1, 4  ;;  %s37_s15 = int_to_ptr.hbm [resolvable:$true] %s36_s15 }
   0x4   :  { %20 = vsyncpa [#allocation4], 0  ;;  %s2716_s16 = smov [#allocation5]   ;;  %s60_s20 = sshll.u32 %s2864_s3, 4  ;;  %s61_s20 = int_to_ptr.hbm [resolvable:$true] %s60_s20 }
   0x5   :  { %s38_s17 = sshll.u32 %s2716_s16, 4  ;;  %s2717_s21 = smov 256   ;;  %s39_s17 = int_to_ptr.vmem [resolvable:$true] %s38_s17 }
   0x6   :  { %s2718_s22 = smov 16   ;;  %s2719_s23 = smov [#allocation8]  }
   0x7   :  { %44 = dma.hbm_to_vmem [thread:$0]  %s37_s15, 1024, %s39_s17, [#allocation6], %s2717_s21, %s2717_s21, %s2718_s22  }
   0x8   :  { %s62_s24 = sshll.u32 %s2719_s23, 4  ;;  %s84_s27 = sshll.u32 %s2866_s5, 4  ;;  %s63_s24 = int_to_ptr.vmem [resolvable:$true] %s62_s24  ;;  %s85_s27 = int_to_ptr.hbm [resolvable:$true] %s84_s27 }
   0x9   :  { %68 = dma.hbm_to_vmem [thread:$0]  %s61_s20, 16384, %s63_s24, [#allocation9], %s2717_s21, %s2717_s21, %s2718_s22  }
   0xa   :  { %s2720_s1 = smov [#allocation11]   ;;  %s26_s3 = sshll.u32 %s2861_s0, 4  ;;  %s27_s3 = int_to_ptr.hbm [resolvable:$true] %s26_s3 }
   0xb   :  { %s86_s28 = sshll.u32 %s2720_s1, 4  ;;  %s2721_s11 = smov 64   ;;  %s87_s28 = int_to_ptr.vmem [resolvable:$true] %s86_s28 }
   0xc   :  { %s2722_s12 = smov 4   ;;  %s2723_s13 = smov [#allocation2]  }
   0xd   :  { %92 = dma.hbm_to_vmem [thread:$0]  %s85_s27, 4096, %s87_s28, [#allocation12], %s2721_s11, %s2721_s11, %s2722_s12  }
   0xe   :  { %s28_s14 = sshll.u32 %s2723_s13, 4  ;;  %s50_s5 = sshll.u32 %s2863_s2, 4  ;;  %s29_s14 = int_to_ptr.vmem [resolvable:$true] %s28_s14  ;;  %s51_s5 = int_to_ptr.hbm [resolvable:$true] %s50_s5 }
   0xf   :  { %31 = dma.hbm_to_vmem [thread:$0]  %s27_s3, 64, %s29_s14, [#allocation3]  }
  0x10   :  { %s74_s19 = sshll.u32 %s2865_s4, 4  ;;  %s2724_s20 = smov [#allocation7]   ;;  %s75_s19 = int_to_ptr.hbm [resolvable:$true] %s74_s19 }
  0x11   :  { %s52_s21 = sshll.u32 %s2724_s20, 4  ;;  %s2725_s0 = smov [#allocation10]   ;;  %s53_s21 = int_to_ptr.vmem [resolvable:$true] %s52_s21 }
  0x12   :  { %55 = dma.hbm_to_vmem [thread:$0]  %s51_s5, 64, %s53_s21, [#allocation6]  }
  0x13   :  { %s76_s22 = sshll.u32 %s2725_s0, 4  ;;  %s99_s25 = sshll.u32 %s2868_s7, 4  ;;  %s77_s22 = int_to_ptr.vmem [resolvable:$true] %s76_s22  ;;  %s100_s25 = int_to_ptr.hbm [resolvable:$true] %s99_s25 }
  0x14   :  { %79 = dma.hbm_to_vmem [thread:$0]  %s75_s19, 64, %s77_s22, [#allocation9]  }
  0x15   :  { %s2726_s2 = smov [#allocation13]   ;;  %s2727_s27 = smov 128  }
  0x16   :  { %s101_s26 = sshll.u32 %s2726_s2, 4  ;;  %s2728_s1 = smov 8   ;;  %s102_s26 = int_to_ptr.vmem [resolvable:$true] %s101_s26 }
  0x17   :  { %107 = dma.hbm_to_vmem [thread:$0]  %s100_s25, 2048, %s102_s26, [#allocation12], %s2727_s27, %s2727_s27, %s2728_s1  }
  0x18   :  { %2706 = dma.done.wait [#allocation3], 64  }
  0x19   :  { %2707 = vsyncadd [#allocation3], 4294967232 }
  0x1a   :  { %2708 = dma.done.wait [#allocation6], 1088  }
  0x1b   :  { %2709 = vsyncadd [#allocation6], 4294966208 }
  0x1c   :  { %2710 = dma.done.wait [#allocation9], 16448  }
  0x1d   :  { %2711 = vsyncadd [#allocation9], 4294950848 }
  0x1e   :  { %2712 = dma.done.wait [#allocation12], 6144  }
  0x1f   :  { %2713 = vsyncadd [#allocation12], 4294961152  ;;  %v1669_v0 = vld [vmem:[#allocation5 + $0x20] sm:$0xf]  ;;  %v2333_v1 = vld [vmem:[#allocation5 + $0x2c] sm:$0xf0] }
  0x20   :  { %v1677_v2 = vld [vmem:[#allocation5 + $0x28] sm:$0xf]  ;;  %v1670_v3 = vor.u32 %v2333_v1, %v1669_v0  ;;  %v2334_v4 = vld [vmem:[#allocation5 + $0x34] sm:$0xf0]  ;;  %v2332_v5 = vld [vmem:[#allocation5 + $0x2c] sm:$0xf] }
  0x21   :  { %v1679_v6 = vld [vmem:[#allocation5 + $0x38] sm:$0xf0]  ;;  %v1678_v7 = vor.u32 %v2334_v4, %v1677_v2  ;;  %v1653_v9 = vld [vmem:[#allocation5] sm:$0xf]  ;;  %v2329_v10 = vld [vmem:[#allocation5 + $0xc] sm:$0xf0] }
  0x22   :  { %v1682_v8 = vor.u32 %v2332_v5, %v1679_v6  ;;  %v1661_v11 = vld [vmem:[#allocation5 + $0x8] sm:$0xf]  ;;  %208 = vmatpush.bf16.msra.mxu1 %v1670_v3  ;;  %v1654_v12 = vor.u32 %v2329_v10, %v1653_v9  ;;  %v2330_v13 = vld [vmem:[#allocation5 + $0x14] sm:$0xf0]  ;;  %v2328_v14 = vld [vmem:[#allocation5 + $0xc] sm:$0xf] }
  0x23   :  { %v1663_v15 = vld [vmem:[#allocation5 + $0x18] sm:$0xf0]  ;;  %234 = vmatpush.bf16.msra.mxu2 %v1678_v7  ;;  %v1662_v16 = vor.u32 %v2330_v13, %v1661_v11  ;;  %vm198_vm0 = vcmask 261120   ;;  %v2331_v18 = vld [vmem:[#allocation5 + $0x24] sm:$0xf]  ;;  %s2729_s29 = smov [#allocation14]  }
  0x24   :  { %247 = vmatpush.bf16.msra.mxu3 %v1682_v8  ;;  %v1666_v17 = vor.u32 %v2328_v14, %v1663_v15  ;;  %v1671_v19 = vld [vmem:[#allocation5 + $0x30] sm:$0xf0]  ;;  %v2806_v20 = vld [vmem:[#allocation2] sm:$0xf]  ;;  %v2327_v22 = vld [vmem:[#allocation5 + $0x4] sm:$0xf] }
  0x25   :  { %v1674_v21 = vor.u32 %v2331_v18, %v1671_v19  ;;  %v1655_v23 = vld [vmem:[#allocation5 + $0x10] sm:$0xf0]  ;;  %v1801_v24 = vld [vmem:[#allocation8 + $0xe0] sm:$0xf]  ;;  %s1632_s30 = sshll.u32 %s2729_s29, 4  ;;  %s1634_s12 = sshll.u32 %s2870_s9, 4  ;;  %s1633_s30 = int_to_ptr.vmem [resolvable:$true] %s1632_s30  ;;  %s1635_s12 = int_to_ptr.hbm [resolvable:$true] %s1634_s12 }
  0x26   :  { %v2365_v25 = vld [vmem:[#allocation8 + $0xec] sm:$0xf0]  ;;  %v1785_v26 = vld [vmem:[#allocation8 + $0xc0] sm:$0xf]  ;;  %209 = vmatpush.bf16.msra.mxu1 %v1654_v12  ;;  %v1658_v34 = vor.u32 %v2327_v22, %v1655_v23  ;;  %vm1625_vm2 = vcmask 7168  }
  0x27   :  { %v2361_v27 = vld [vmem:[#allocation8 + $0xcc] sm:$0xf0]  ;;  %v1802_v28 = vor.u32 %v2365_v25, %v1801_v24  ;;  %v2057_v29 = vld [vmem:[#allocation8 + $0x2e0] sm:$0xf]  ;;  %235 = vmatpush.bf16.msra.mxu2 %v1662_v16 }
  0x28   :  { %v2429_v30 = vld [vmem:[#allocation8 + $0x2ec] sm:$0xf0]  ;;  %v2185_v31 = vld [vmem:[#allocation8 + $0x3e0] sm:$0xf]  ;;  %248 = vmatpush.bf16.msra.mxu3 %v1666_v17  ;;  %v1786_v35 = vor.u32 %v2361_v27, %v1785_v26 }
  0x29   :  { %v2058_v32 = vor.u32 %v2429_v30, %v2057_v29  ;;  %v2461_v33 = vld [vmem:[#allocation8 + $0x3ec] sm:$0xf0]  ;;  %1040 = vmatpush.bf16.msra.mxu0 %v1802_v28  ;;  %v2041_v37 = vld [vmem:[#allocation8 + $0x2c0] sm:$0xf]  ;;  %1683 = vmatmul.msk.bf16.vlgmr.msra.gmra.mxu1 %vm198_vm0, %v2806_v20 }
  0x2a   :  { %221 = vmatpush.bf16.msrb.mxu1 %v1674_v21  ;;  %v2186_v36 = vor.u32 %v2461_v33, %v2185_v31  ;;  %v2425_v38 = vld [vmem:[#allocation8 + $0x2cc] sm:$0xf0]  ;;  %v2169_v39 = vld [vmem:[#allocation8 + $0x3c0] sm:$0xf]  ;;  %1685 = vmatmul.msk.bf16.vlgmr.msra.gmra.mxu2 %vm198_vm0, %v2806_v20 }
  0x2b   :  { %1066 = vmatpush.bf16.msrb.mxu2 %v2058_v32  ;;  %v1769_v40 = vld [vmem:[#allocation8 + $0xa0] sm:$0xf]  ;;  %v2357_v41 = vld [vmem:[#allocation8 + $0xac] sm:$0xf0]  ;;  %v2042_v42 = vor.u32 %v2425_v38, %v2041_v37  ;;  %1686 = vmatmul.msk.bf16.vlgmr.msra.gmra.mxu3 %vm198_vm0, %v2806_v20 }
  0x2c   :  { %v2457_v43 = vld [vmem:[#allocation8 + $0x3cc] sm:$0xf0]  ;;  %v2025_v44 = vld [vmem:[#allocation8 + $0x2a0] sm:$0xf]  ;;  %1079 = vmatpush.bf16.msrb.mxu3 %v2186_v36  ;;  %v1770_v48 = vor.u32 %v2357_v41, %v1769_v40 }
  0x2d   :  { %v2421_v45 = vld [vmem:[#allocation8 + $0x2ac] sm:$0xf0]  ;;  %v2170_v46 = vor.u32 %v2457_v43, %v2169_v39  ;;  %v2153_v47 = vld [vmem:[#allocation8 + $0x3a0] sm:$0xf]  ;;  %1041 = vmatpush.bf16.msra.mxu0 %v1786_v35  ;;  %v1803_v43 = vld [vmem:[#allocation8 + $0xf0] sm:$0xf0] }
  0x2e   :  { %222 = vmatpush.bf16.msrb.mxu1 %v1658_v34  ;;  %v2453_v49 = vld [vmem:[#allocation8 + $0x3ac] sm:$0xf0]  ;;  %v1929_v50 = vld [vmem:[#allocation8 + $0x1e0] sm:$0xf]  ;;  %v2026_v54 = vor.u32 %v2421_v45, %v2025_v44 }
  0x2f   :  { %v2397_v51 = vld [vmem:[#allocation8 + $0x1ec] sm:$0xf0]  ;;  %1067 = vmatpush.bf16.msrb.mxu2 %v2042_v42  ;;  %v1753_v52 = vld [vmem:[#allocation8 + $0x80] sm:$0xf]  ;;  %v2154_v59 = vor.u32 %v2453_v49, %v2153_v47  ;;  %v2059_v49 = vld [vmem:[#allocation8 + $0x2f0] sm:$0xf0] }
  0x30   :  { %v2353_v53 = vld [vmem:[#allocation8 + $0x8c] sm:$0xf0]  ;;  %v1930_v55 = vor.u32 %v2397_v51, %v1929_v50  ;;  %v2009_v56 = vld [vmem:[#allocation8 + $0x280] sm:$0xf]  ;;  %1080 = vmatpush.bf16.msrb.mxu3 %v2170_v46 }
  0x31   :  { %v2417_v57 = vld [vmem:[#allocation8 + $0x28c] sm:$0xf0]  ;;  %v1913_v58 = vld [vmem:[#allocation8 + $0x1c0] sm:$0xf]  ;;  %1042 = vmatpush.bf16.msra.mxu0 %v1770_v48  ;;  %v1754_v61 = vor.u32 %v2353_v53, %v1753_v52  ;;  %v2427_v48 = vld [vmem:[#allocation8 + $0x2e4] sm:$0xf] }
  0x32   :  { %1053 = vmatpush.bf16.msra.mxu1 %v1930_v55  ;;  %v2393_v60 = vld [vmem:[#allocation8 + $0x1cc] sm:$0xf0]  ;;  %v1737_v62 = vld [vmem:[#allocation8 + $0x60] sm:$0xf]  ;;  %v2010_v3 = vor.u32 %v2417_v57, %v2009_v56  ;;  %v2459_v57 = vld [vmem:[#allocation8 + $0x3e4] sm:$0xf] }
  0x33   :  { %v2137_v63 = vld [vmem:[#allocation8 + $0x380] sm:$0xf]  ;;  %v2449_v0 = vld [vmem:[#allocation8 + $0x38c] sm:$0xf0]  ;;  %v1914_v1 = vor.u32 %v2393_v60, %v1913_v58  ;;  %1068 = vmatpush.bf16.msrb.mxu2 %v2026_v54  ;;  %v2187_v58 = vld [vmem:[#allocation8 + $0x3f0] sm:$0xf0] }
  0x34   :  { %v2349_v2 = vld [vmem:[#allocation8 + $0x6c] sm:$0xf0]  ;;  %v1897_v4 = vld [vmem:[#allocation8 + $0x1a0] sm:$0xf]  ;;  %1081 = vmatpush.bf16.msrb.mxu3 %v2154_v59  ;;  %v2138_v8 = vor.u32 %v2449_v0, %v2137_v63  ;;  %v2359_v59 = vld [vmem:[#allocation8 + $0xc4] sm:$0xf] }
  0x35   :  { %v2389_v5 = vld [vmem:[#allocation8 + $0x1ac] sm:$0xf0]  ;;  %v1993_v6 = vld [vmem:[#allocation8 + $0x260] sm:$0xf]  ;;  %1043 = vmatpush.bf16.msra.mxu0 %v1754_v61  ;;  %v1738_v11 = vor.u32 %v2349_v2, %v1737_v62  ;;  %v1787_v60 = vld [vmem:[#allocation8 + $0xd0] sm:$0xf0]  ;;  %v2062_v61 = vor.u32 %v2427_v48, %v2059_v49 }
  0x36   :  { %v2413_v7 = vld [vmem:[#allocation8 + $0x26c] sm:$0xf0]  ;;  %1054 = vmatpush.bf16.msra.mxu1 %v1914_v1  ;;  %v2121_v9 = vld [vmem:[#allocation8 + $0x360] sm:$0xf]  ;;  %v1898_v10 = vor.u32 %v2389_v5, %v1897_v4  ;;  %v2423_v63 = vld [vmem:[#allocation8 + $0x2c4] sm:$0xf] }
  0x37   :  { %v2445_v12 = vld [vmem:[#allocation8 + $0x36c] sm:$0xf0]  ;;  %v1881_v13 = vld [vmem:[#allocation8 + $0x180] sm:$0xf]  ;;  %1069 = vmatpush.bf16.msrb.mxu2 %v2010_v3  ;;  %v1994_v17 = vor.u32 %v2413_v7, %v1993_v6  ;;  %v2043_v0 = vld [vmem:[#allocation8 + $0x2d0] sm:$0xf0]  ;;  %v2190_v3 = vor.u32 %v2459_v57, %v2187_v58  ;;  %v1790_v7 = vor.u32 %v2359_v59, %v1787_v60 }
  0x38   :  { %v2385_v14 = vld [vmem:[#allocation8 + $0x18c] sm:$0xf0]  ;;  %v1721_v15 = vld [vmem:[#allocation8 + $0x40] sm:$0xf]  ;;  %1082 = vmatpush.bf16.msrb.mxu3 %v2138_v8  ;;  %v2122_v21 = vor.u32 %v2445_v12, %v2121_v9  ;;  %v2455_v1 = vld [vmem:[#allocation8 + $0x3c4] sm:$0xf]  ;;  %v2046_v12 = vor.u32 %v2423_v63, %v2043_v0 }
  0x39   :  { %v2345_v16 = vld [vmem:[#allocation8 + $0x4c] sm:$0xf0]  ;;  %v1977_v18 = vld [vmem:[#allocation8 + $0x240] sm:$0xf]  ;;  %v1882_v23 = vor.u32 %v2385_v14, %v1881_v13  ;;  %1044 = vmatpush.bf16.msra.mxu0 %v1738_v11  ;;  %1684 = vmatmul.msk.bf16.vlgmr.msrb.gmra.mxu1 %vm198_vm0, %v2806_v20  ;;  %v2363_v20 = vld [vmem:[#allocation8 + $0xe4] sm:$0xf] }
  0x3a   :  { %v2409_v19 = vld [vmem:[#allocation8 + $0x24c] sm:$0xf0]  ;;  %1055 = vmatpush.bf16.msra.mxu1 %v1898_v10  ;;  %v2105_v22 = vld [vmem:[#allocation8 + $0x340] sm:$0xf]  ;;  %v1722_v24 = vor.u32 %v2345_v16, %v1721_v15  ;;  %v1806_v55 = vor.u32 %v2363_v20, %v1803_v43  ;;  %v2171_v4 = vld [vmem:[#allocation8 + $0x3d0] sm:$0xf0] }
  0x3b   :  { %v2441_v25 = vld [vmem:[#allocation8 + $0x34c] sm:$0xf0]  ;;  %v1865_v26 = vld [vmem:[#allocation8 + $0x160] sm:$0xf]  ;;  %1070 = vmatpush.bf16.msrb.mxu2 %v1994_v17  ;;  %v1978_v30 = vor.u32 %v2409_v19, %v1977_v18  ;;  %v2395_v8 = vld [vmem:[#allocation8 + $0x1e4] sm:$0xf]  ;;  %v2174_v16 = vor.u32 %v2455_v1, %v2171_v4 }
  0x3c   :  { %v2381_v27 = vld [vmem:[#allocation8 + $0x16c] sm:$0xf0]  ;;  %v1705_v28 = vld [vmem:[#allocation8 + $0x20] sm:$0xf]  ;;  %1083 = vmatpush.bf16.msrb.mxu3 %v2122_v21  ;;  %v2106_v33 = vor.u32 %v2441_v25, %v2105_v22  ;;  %v1931_v9 = vld [vmem:[#allocation8 + $0x1f0] sm:$0xf0] }
  0x3d   :  { %v2341_v29 = vld [vmem:[#allocation8 + $0x2c] sm:$0xf0]  ;;  %v1961_v31 = vld [vmem:[#allocation8 + $0x220] sm:$0xf]  ;;  %v1866_v35 = vor.u32 %v2381_v27, %v1865_v26  ;;  %1045 = vmatpush.bf16.msra.mxu0 %v1722_v24  ;;  %v2355_v10 = vld [vmem:[#allocation8 + $0xa4] sm:$0xf]  ;;  %v1934_v18 = vor.u32 %v2395_v8, %v1931_v9 }
  0x3e   :  { %v2405_v32 = vld [vmem:[#allocation8 + $0x22c] sm:$0xf0]  ;;  %1056 = vmatpush.bf16.msra.mxu1 %v1882_v23  ;;  %v2089_v34 = vld [vmem:[#allocation8 + $0x320] sm:$0xf]  ;;  %v1706_v36 = vor.u32 %v2341_v29, %v1705_v28  ;;  %v1771_v11 = vld [vmem:[#allocation8 + $0xb0] sm:$0xf0] }
  0x3f   :  { %v2437_v37 = vld [vmem:[#allocation8 + $0x32c] sm:$0xf0]  ;;  %v1849_v38 = vld [vmem:[#allocation8 + $0x140] sm:$0xf]  ;;  %1071 = vmatpush.bf16.msrb.mxu2 %v1978_v30  ;;  %v1962_v42 = vor.u32 %v2405_v32, %v1961_v31  ;;  %v2419_v13 = vld [vmem:[#allocation8 + $0x2a4] sm:$0xf]  ;;  %v1774_v19 = vor.u32 %v2355_v10, %v1771_v11 }
  0x40   :  { %v2377_v39 = vld [vmem:[#allocation8 + $0x14c] sm:$0xf0]  ;;  %v1689_v40 = vld [vmem:[#allocation8] sm:$0xf]  ;;  %1084 = vmatpush.bf16.msrb.mxu3 %v2106_v33  ;;  %v2090_v46 = vor.u32 %v2437_v37, %v2089_v34  ;;  %v2027_v14 = vld [vmem:[#allocation8 + $0x2b0] sm:$0xf0] }
  0x41   :  { %v2337_v41 = vld [vmem:[#allocation8 + $0xc] sm:$0xf0]  ;;  %v1945_v44 = vld [vmem:[#allocation8 + $0x200] sm:$0xf]  ;;  %v1850_v50 = vor.u32 %v2377_v39, %v1849_v38  ;;  %1046 = vmatpush.bf16.msra.mxu0 %v1706_v36  ;;  %v2451_v17 = vld [vmem:[#allocation8 + $0x3a4] sm:$0xf]  ;;  %v2030_v26 = vor.u32 %v2419_v13, %v2027_v14 }
  0x42   :  { %v2401_v45 = vld [vmem:[#allocation8 + $0x20c] sm:$0xf0]  ;;  %1057 = vmatpush.bf16.msra.mxu1 %v1866_v35  ;;  %v2073_v47 = vld [vmem:[#allocation8 + $0x300] sm:$0xf]  ;;  %v1690_v51 = vor.u32 %v2337_v41, %v1689_v40  ;;  %v2155_v21 = vld [vmem:[#allocation8 + $0x3b0] sm:$0xf0] }
  0x43   :  { %v2433_v52 = vld [vmem:[#allocation8 + $0x30c] sm:$0xf0]  ;;  %v1833_v53 = vld [vmem:[#allocation8 + $0x120] sm:$0xf]  ;;  %1072 = vmatpush.bf16.msrb.mxu2 %v1962_v42  ;;  %v1946_v56 = vor.u32 %v2401_v45, %v1945_v44  ;;  %v2391_v22 = vld [vmem:[#allocation8 + $0x1c4] sm:$0xf]  ;;  %v2158_v29 = vor.u32 %v2451_v17, %v2155_v21 }
  0x44   :  { %v2373_v54 = vld [vmem:[#allocation8 + $0x12c] sm:$0xf0]  ;;  %1085 = vmatpush.bf16.msrb.mxu3 %v2090_v46  ;;  %v2074_v62 = vor.u32 %v2433_v52, %v2073_v47  ;;  %v1817_v5 = vld [vmem:[#allocation8 + $0x100] sm:$0xf]  ;;  %v1915_v23 = vld [vmem:[#allocation8 + $0x1d0] sm:$0xf0] }
  0x45   :  { %v1834_v2 = vor.u32 %v2373_v54, %v1833_v53  ;;  %1047 = vmatpush.bf16.msra.mxu0 %v1690_v51  ;;  %v2369_v6 = vld [vmem:[#allocation8 + $0x10c] sm:$0xf0]  ;;  %v2351_v24 = vld [vmem:[#allocation8 + $0x84] sm:$0xf]  ;;  %v1755_v25 = vld [vmem:[#allocation8 + $0x90] sm:$0xf0]  ;;  %v1918_v30 = vor.u32 %v2391_v22, %v1915_v23 }
  0x46   :  { %1058 = vmatpush.bf16.msra.mxu1 %v1850_v50  ;;  %v1818_v15 = vor.u32 %v2369_v6, %v1817_v5  ;;  %v2415_v27 = vld [vmem:[#allocation8 + $0x284] sm:$0xf]  ;;  %v2011_v28 = vld [vmem:[#allocation8 + $0x290] sm:$0xf0]  ;;  %v1758_v31 = vor.u32 %v2351_v24, %v1755_v25 }
  0x47   :  { %1073 = vmatpush.bf16.msrb.mxu2 %v1946_v56  ;;  %v2447_v32 = vld [vmem:[#allocation8 + $0x384] sm:$0xf]  ;;  %v2139_v33 = vld [vmem:[#allocation8 + $0x390] sm:$0xf0]  ;;  %v2014_v36 = vor.u32 %v2415_v27, %v2011_v28 }
  0x48   :  { %1086 = vmatpush.bf16.msrb.mxu3 %v2074_v62  ;;  %v2347_v34 = vld [vmem:[#allocation8 + $0x64] sm:$0xf]  ;;  %v1739_v35 = vld [vmem:[#allocation8 + $0x70] sm:$0xf0]  ;;  %v2142_v37 = vor.u32 %v2447_v32, %v2139_v33 }
  0x49   :  { %1092 = vmatpush.bf16.msrb.mxu0 %v1806_v55  ;;  %v1742_v38 = vor.u32 %v2347_v34, %v1739_v35  ;;  %v2343_v39 = vld [vmem:[#allocation8 + $0x44] sm:$0xf]  ;;  %v1723_v40 = vld [vmem:[#allocation8 + $0x50] sm:$0xf0] }
  0x4a   :  { %1059 = vmatpush.bf16.msra.mxu1 %v1834_v2  ;;  %v1726_v41 = vor.u32 %v2343_v39, %v1723_v40  ;;  %v2411_v20 = vld [vmem:[#allocation8 + $0x264] sm:$0xf]  ;;  %v1995_v42 = vld [vmem:[#allocation8 + $0x270] sm:$0xf0] }
  0x4b   :  { %1118 = vmatpush.bf16.msra.mxu2 %v2062_v61  ;;  %v2443_v43 = vld [vmem:[#allocation8 + $0x364] sm:$0xf]  ;;  %v1998_v44 = vor.u32 %v2411_v20, %v1995_v42  ;;  %v2123_v45 = vld [vmem:[#allocation8 + $0x370] sm:$0xf0] }
  0x4c   :  { %1131 = vmatpush.bf16.msra.mxu3 %v2190_v3  ;;  %v2126_v46 = vor.u32 %v2443_v43, %v2123_v45  ;;  %v2339_v47 = vld [vmem:[#allocation8 + $0x24] sm:$0xf]  ;;  %v1707_v48 = vld [vmem:[#allocation8 + $0x30] sm:$0xf0]  ;;  %v2430_v45 = vld [vmem:[#allocation8 + $0x2f4] sm:$0xf0] }
  0x4d   :  { %1093 = vmatpush.bf16.msrb.mxu0 %v1790_v7  ;;  %v2387_v49 = vld [vmem:[#allocation8 + $0x1a4] sm:$0xf]  ;;  %v1710_v50 = vor.u32 %v2339_v47, %v1707_v48  ;;  %v1899_v51 = vld [vmem:[#allocation8 + $0x1b0] sm:$0xf0]  ;;  %v2462_v47 = vld [vmem:[#allocation8 + $0x3f4] sm:$0xf0] }
  0x4e   :  { %1060 = vmatpush.bf16.msra.mxu1 %v1818_v15  ;;  %v1902_v52 = vor.u32 %v2387_v49, %v1899_v51  ;;  %v2407_v53 = vld [vmem:[#allocation8 + $0x244] sm:$0xf]  ;;  %v1979_v54 = vld [vmem:[#allocation8 + $0x250] sm:$0xf0]  ;;  %v1777_v48 = vld [vmem:[#allocation8 + $0xa8] sm:$0xf] }
  0x4f   :  { %1119 = vmatpush.bf16.msra.mxu2 %v2046_v12  ;;  %v2439_v55 = vld [vmem:[#allocation8 + $0x344] sm:$0xf]  ;;  %v1982_v56 = vor.u32 %v2407_v53, %v1979_v54  ;;  %v2107_v57 = vld [vmem:[#allocation8 + $0x350] sm:$0xf0]  ;;  %v2358_v49 = vld [vmem:[#allocation8 + $0xb4] sm:$0xf0] }
  0x50   :  { %1132 = vmatpush.bf16.msra.mxu3 %v2174_v16  ;;  %v2110_v58 = vor.u32 %v2439_v55, %v2107_v57  ;;  %v2335_v59 = vld [vmem:[#allocation8 + $0x4] sm:$0xf]  ;;  %v1691_v60 = vld [vmem:[#allocation8 + $0x10] sm:$0xf0]  ;;  %v2049_v54 = vld [vmem:[#allocation8 + $0x2c8] sm:$0xf]  ;;  %v1778_v57 = vor.u32 %v2358_v49, %v1777_v48 }
  0x51   :  { %1094 = vmatpush.bf16.msrb.mxu0 %v1774_v19  ;;  %v2383_v61 = vld [vmem:[#allocation8 + $0x184] sm:$0xf]  ;;  %v1694_v62 = vor.u32 %v2335_v59, %v1691_v60  ;;  %v1883_v63 = vld [vmem:[#allocation8 + $0x190] sm:$0xf0]  ;;  %v2177_v59 = vld [vmem:[#allocation8 + $0x3c8] sm:$0xf] }
  0x52   :  { %1105 = vmatpush.bf16.msrb.mxu1 %v1934_v18  ;;  %v1886_v0 = vor.u32 %v2383_v61, %v1883_v63  ;;  %v2403_v1 = vld [vmem:[#allocation8 + $0x224] sm:$0xf]  ;;  %v1963_v2 = vld [vmem:[#allocation8 + $0x230] sm:$0xf0]  ;;  %v2458_v60 = vld [vmem:[#allocation8 + $0x3d4] sm:$0xf0] }
  0x53   :  { %1120 = vmatpush.bf16.msra.mxu2 %v2030_v26  ;;  %v2435_v3 = vld [vmem:[#allocation8 + $0x324] sm:$0xf]  ;;  %v2091_v4 = vld [vmem:[#allocation8 + $0x330] sm:$0xf0]  ;;  %v1966_v5 = vor.u32 %v2403_v1, %v1963_v2  ;;  %v148_v26 = vld [vmem:[#allocation7] sm:$0xf] }
  0x54   :  { %1133 = vmatpush.bf16.msra.mxu3 %v2158_v29  ;;  %v2094_v6 = vor.u32 %v2435_v3, %v2091_v4  ;;  %v2379_v7 = vld [vmem:[#allocation8 + $0x164] sm:$0xf]  ;;  %v1867_v8 = vld [vmem:[#allocation8 + $0x170] sm:$0xf0]  ;;  %v150_v27 = vperm.slane %v148_v26, 0  ;;  %v152_v33 = vperm.slane %v148_v26, 2  ;;  %v2178_v3 = vor.u32 %v2458_v60, %v2177_v59 }
  0x55   :  { %1095 = vmatpush.bf16.msrb.mxu0 %v1758_v31  ;;  %v1870_v9 = vor.u32 %v2379_v7, %v1867_v8  ;;  %v2399_v10 = vld [vmem:[#allocation8 + $0x204] sm:$0xf]  ;;  %v1947_v11 = vld [vmem:[#allocation8 + $0x210] sm:$0xf0]  ;;  %v2366_v31 = vld [vmem:[#allocation8 + $0xf4] sm:$0xf0] }
  0x56   :  { %1106 = vmatpush.bf16.msrb.mxu1 %v1918_v30  ;;  %v2431_v12 = vld [vmem:[#allocation8 + $0x304] sm:$0xf]  ;;  %v1950_v13 = vor.u32 %v2399_v10, %v1947_v11  ;;  %v2075_v14 = vld [vmem:[#allocation8 + $0x310] sm:$0xf0]  ;;  %v1809_v30 = vld [vmem:[#allocation8 + $0xe8] sm:$0xf] }
  0x57   :  { %1121 = vmatpush.bf16.msra.mxu2 %v2014_v36  ;;  %v2078_v15 = vor.u32 %v2431_v12, %v2075_v14  ;;  %v2375_v16 = vld [vmem:[#allocation8 + $0x144] sm:$0xf]  ;;  %v1851_v17 = vld [vmem:[#allocation8 + $0x150] sm:$0xf0]  ;;  %v153_v34 = vperm.slane %v148_v26, 3  ;;  %v1810_v35 = vor.u32 %v2366_v31, %v1809_v30  ;;  %v151_v61 = vperm.slane %v148_v26, 1 }
  0x58   :  { %1134 = vmatpush.bf16.msra.mxu3 %v2142_v37  ;;  %v1854_v18 = vor.u32 %v2375_v16, %v1851_v17  ;;  %v2371_v19 = vld [vmem:[#allocation8 + $0x124] sm:$0xf]  ;;  %v1835_v21 = vld [vmem:[#allocation8 + $0x130] sm:$0xf0]  ;;  %v1793_v37 = vld [vmem:[#allocation8 + $0xc8] sm:$0xf] }
  0x59   :  { %1096 = vmatpush.bf16.msrb.mxu0 %v1742_v38  ;;  %v1838_v22 = vor.u32 %v2371_v19, %v1835_v21  ;;  %v2367_v23 = vld [vmem:[#allocation8 + $0x104] sm:$0xf]  ;;  %v1819_v24 = vld [vmem:[#allocation8 + $0x110] sm:$0xf0]  ;;  %v2362_v38 = vld [vmem:[#allocation8 + $0xd4] sm:$0xf0] }
  0x5a   :  { %1107 = vmatpush.bf16.msrb.mxu1 %v1902_v52  ;;  %v1822_v25 = vor.u32 %v2367_v23, %v1819_v24  ;;  %v2354_v63 = vld [vmem:[#allocation8 + $0x94] sm:$0xf0]  ;;  %v2033_v4 = vld [vmem:[#allocation8 + $0x2a8] sm:$0xf]  ;;  %v2364_v59 = vld [vmem:[#allocation8 + $0xec] sm:$0xf] }
  0x5b   :  { %1122 = vmatpush.bf16.msra.mxu2 %v1998_v44  ;;  %v1794_v44 = vor.u32 %v2362_v38, %v1793_v37  ;;  %v2422_v7 = vld [vmem:[#allocation8 + $0x2b4] sm:$0xf0]  ;;  %v2161_v8 = vld [vmem:[#allocation8 + $0x3a8] sm:$0xf]  ;;  %v1811_v60 = vld [vmem:[#allocation8 + $0xf8] sm:$0xf0] }
  0x5c   :  { %1135 = vmatpush.bf16.msra.mxu3 %v2126_v46  ;;  %v2193_v46 = vld [vmem:[#allocation8 + $0x3e8] sm:$0xf]  ;;  %v2350_v12 = vld [vmem:[#allocation8 + $0x74] sm:$0xf0]  ;;  %v2034_v16 = vor.u32 %v2422_v7, %v2033_v4 }
  0x5d   :  { %1097 = vmatpush.bf16.msrb.mxu0 %v1726_v41  ;;  %v2065_v41 = vld [vmem:[#allocation8 + $0x2e8] sm:$0xf]  ;;  %v2194_v53 = vor.u32 %v2462_v47, %v2193_v46  ;;  %v2398_v14 = vld [vmem:[#allocation8 + $0x1f4] sm:$0xf0] }
  0x5e   :  { %1108 = vmatpush.bf16.msrb.mxu1 %v1886_v0  ;;  %v2066_v52 = vor.u32 %v2430_v45, %v2065_v41  ;;  %v1745_v11 = vld [vmem:[#allocation8 + $0x68] sm:$0xf]  ;;  %v2418_v19 = vld [vmem:[#allocation8 + $0x294] sm:$0xf0] }
  0x5f   :  { %1123 = vmatpush.bf16.msra.mxu2 %v1982_v56  ;;  %v2145_v21 = vld [vmem:[#allocation8 + $0x388] sm:$0xf]  ;;  %v1746_v24 = vor.u32 %v2350_v12, %v1745_v11  ;;  %v2446_v37 = vld [vmem:[#allocation8 + $0x374] sm:$0xf0] }
  0x60   :  { %1136 = vmatpush.bf16.msra.mxu3 %v2110_v58  ;;  %v2426_v58 = vld [vmem:[#allocation8 + $0x2d4] sm:$0xf0]  ;;  %v1729_v26 = vld [vmem:[#allocation8 + $0x48] sm:$0xf] }
  0x61   :  { %1098 = vmatpush.bf16.msrb.mxu0 %v1710_v50  ;;  %v2050_v2 = vor.u32 %v2426_v58, %v2049_v54  ;;  %v2342_v41 = vld [vmem:[#allocation8 + $0x34] sm:$0xf0]  ;;  %v1985_v45 = vld [vmem:[#allocation8 + $0x248] sm:$0xf] }
  0x62   :  { %1109 = vmatpush.bf16.msrb.mxu1 %v1870_v9  ;;  %v2454_v9 = vld [vmem:[#allocation8 + $0x3b4] sm:$0xf0]  ;;  %v2113_v47 = vld [vmem:[#allocation8 + $0x348] sm:$0xf] }
  0x63   :  { %1124 = vmatpush.bf16.msra.mxu2 %v1966_v5  ;;  %v2162_v17 = vor.u32 %v2454_v9, %v2161_v8  ;;  %v2410_v46 = vld [vmem:[#allocation8 + $0x254] sm:$0xf0]  ;;  %v1873_v4 = vld [vmem:[#allocation8 + $0x168] sm:$0xf]  ;;  %v1795_v9 = vld [vmem:[#allocation8 + $0xd8] sm:$0xf0] }
  0x64   :  { %1137 = vmatpush.bf16.msra.mxu3 %v2094_v6  ;;  %v2442_v48 = vld [vmem:[#allocation8 + $0x354] sm:$0xf0]  ;;  %v2081_v12 = vld [vmem:[#allocation8 + $0x308] sm:$0xf] }
  0x65   :  { %1099 = vmatpush.bf16.msrb.mxu0 %v1694_v62  ;;  %v1761_v62 = vld [vmem:[#allocation8 + $0x88] sm:$0xf]  ;;  %v2386_v54 = vld [vmem:[#allocation8 + $0x194] sm:$0xf0]  ;;  %v2114_v58 = vor.u32 %v2442_v48, %v2113_v47 }
  0x66   :  { %1110 = vmatpush.bf16.msrb.mxu1 %v1854_v18  ;;  %v1762_v6 = vor.u32 %v2354_v63, %v1761_v62  ;;  %v2017_v18 = vld [vmem:[#allocation8 + $0x288] sm:$0xf]  ;;  %v2406_v62 = vld [vmem:[#allocation8 + $0x234] sm:$0xf0] }
  0x67   :  { %1125 = vmatpush.bf16.msra.mxu2 %v1950_v13  ;;  %v1937_v13 = vld [vmem:[#allocation8 + $0x1e8] sm:$0xf]  ;;  %v2018_v30 = vor.u32 %v2418_v19, %v2017_v18  ;;  %v2402_v11 = vld [vmem:[#allocation8 + $0x214] sm:$0xf0]  ;;  %v2195_v18 = vld [vmem:[#allocation8 + $0x3f8] sm:$0xf0] }
  0x68   :  { %1138 = vmatpush.bf16.msra.mxu3 %v2078_v15  ;;  %v2097_v63 = vld [vmem:[#allocation8 + $0x328] sm:$0xf] }
  0x69   :  { %v1825_v48 = vld [vmem:[#allocation8 + $0x108] sm:$0xf] }
  0x6a   :  { %1111 = vmatpush.bf16.msrb.mxu1 %v1838_v22  ;;  %v2450_v22 = vld [vmem:[#allocation8 + $0x394] sm:$0xf0] }
  0x6b   :  { %v2146_v31 = vor.u32 %v2450_v22, %v2145_v21  ;;  %v1857_v21 = vld [vmem:[#allocation8 + $0x148] sm:$0xf]  ;;  %v2378_v22 = vld [vmem:[#allocation8 + $0x154] sm:$0xf0] }
  0x6e   :  { %1112 = vmatpush.bf16.msrb.mxu1 %v1822_v25  ;;  %v1938_v25 = vor.u32 %v2398_v14, %v1937_v13  ;;  %v2434_v13 = vld [vmem:[#allocation8 + $0x314] sm:$0xf0]  ;;  %v2428_v14 = vld [vmem:[#allocation8 + $0x2ec] sm:$0xf] }
  0xa6   :  { %v211_v28 = vpop.f32.mrf.mxu1 }
  0xa7   :  { %v212_v29 = vadd.f32 %v211_v28, %v150_v27  ;;  %v2346_v27 = vld [vmem:[#allocation8 + $0x54] sm:$0xf0]  ;;  %v1921_v28 = vld [vmem:[#allocation8 + $0x1c8] sm:$0xf] }
  0xa8   :  { %v1730_v38 = vor.u32 %v2346_v27, %v1729_v26  ;;  %v2356_v26 = vld [vmem:[#allocation8 + $0xac] sm:$0xf]  ;;  %v1779_v27 = vld [vmem:[#allocation8 + $0xb8] sm:$0xf0] }
  0xa9   :  { %v254_v32 = vmax.f32 %v212_v29, 0.0  ;;  %v2394_v29 = vld [vmem:[#allocation8 + $0x1d4] sm:$0xf0] }
  0xab   :  { %v2816_v36 = vpack.c.bf16 %v254_v32, %v254_v32  ;;  %v2001_v32 = vld [vmem:[#allocation8 + $0x268] sm:$0xf] }
  0xad   :  { %v237_v39 = vpop.f32.mrf.mxu2  ;;  %1048 = vmatmul.bf16.vlgmr.msra.gmra.mxu0 %v2816_v36 }
  0xae   :  { %v250_v40 = vpop.f32.mrf.mxu3  ;;  %v238_v20 = vadd.f32 %v237_v39, %v152_v33  ;;  %1144 = vmatpush.bf16.msra.mxu0 %v1810_v35  ;;  %v213_v43 = vpop.f32.mrf.mxu1  ;;  %v2129_v35 = vld [vmem:[#allocation8 + $0x368] sm:$0xf]  ;;  %v1922_v39 = vor.u32 %v2394_v29, %v1921_v28 }
  0xaf   :  { %v251_v42 = vadd.f32 %v250_v40, %v153_v34  ;;  %v2414_v34 = vld [vmem:[#allocation8 + $0x274] sm:$0xf0]  ;;  %v1713_v40 = vld [vmem:[#allocation8 + $0x28] sm:$0xf] }
  0xb0   :  { %v256_v50 = vmax.f32 %v238_v20, 0.0  ;;  %v1905_v20 = vld [vmem:[#allocation8 + $0x1a8] sm:$0xf]  ;;  %v2002_v43 = vor.u32 %v2414_v34, %v2001_v32  ;;  %v1714_v49 = vor.u32 %v2342_v41, %v1713_v40  ;;  %v2051_v32 = vld [vmem:[#allocation8 + $0x2d8] sm:$0xf0] }
  0xb1   :  { %v257_v51 = vmax.f32 %v251_v42, 0.0  ;;  %v2390_v42 = vld [vmem:[#allocation8 + $0x1b4] sm:$0xf0]  ;;  %v2179_v34 = vld [vmem:[#allocation8 + $0x3d8] sm:$0xf0] }
  0xb2   :  { %v2819_v55 = vpack.c.bf16 %v256_v50, %v256_v50  ;;  %1145 = vmatpush.bf16.msra.mxu0 %v1794_v44  ;;  %v2130_v44 = vor.u32 %v2446_v37, %v2129_v35  ;;  %v1906_v50 = vor.u32 %v2390_v42, %v1905_v20  ;;  %v1782_v35 = vor.u32 %v2356_v26, %v1779_v27  ;;  %v1841_v37 = vld [vmem:[#allocation8 + $0x128] sm:$0xf]  ;;  %v1763_v40 = vld [vmem:[#allocation8 + $0x98] sm:$0xf0]  ;;  %v2420_v42 = vld [vmem:[#allocation8 + $0x2ac] sm:$0xf] }
  0xb3   :  { %v2821_v56 = vpack.c.bf16 %v257_v51, %v257_v51  ;;  %v1697_v51 = vld [vmem:[#allocation8 + $0x8] sm:$0xf]  ;;  %v2336_v27 = vld [vmem:[#allocation8 + $0xc] sm:$0xf] }
  0xb4   :  { %1074 = vmatmul.bf16.vlgmr.msrb.gmra.mxu2 %v2819_v55 }
  0xb5   :  { %1087 = vmatmul.bf16.vlgmr.msrb.gmra.mxu3 %v2821_v56  ;;  %1170 = vmatpush.bf16.msrb.mxu2 %v2066_v52  ;;  %v239_v0 = vpop.f32.mrf.mxu2  ;;  %v2338_v52 = vld [vmem:[#allocation8 + $0x14] sm:$0xf0] }
  0xb6   :  { %1183 = vmatpush.bf16.msrb.mxu3 %v2194_v53  ;;  %v252_v1 = vpop.f32.mrf.mxu3  ;;  %1146 = vmatpush.bf16.msra.mxu0 %v1778_v57  ;;  %v224_v5 = vpop.f32.mrf.mxu1  ;;  %v1889_v53 = vld [vmem:[#allocation8 + $0x188] sm:$0xf]  ;;  %v1986_v57 = vor.u32 %v2410_v46, %v1985_v45  ;;  %v2438_v0 = vld [vmem:[#allocation8 + $0x334] sm:$0xf0]  ;;  %v2452_v45 = vld [vmem:[#allocation8 + $0x3ac] sm:$0xf] }
  0xb7   :  { %v225_v10 = vadd.f32 %v224_v5, %v151_v61  ;;  %v1969_v61 = vld [vmem:[#allocation8 + $0x228] sm:$0xf]  ;;  %v1698_v1 = vor.u32 %v2338_v52, %v1697_v51  ;;  %v2382_v5 = vld [vmem:[#allocation8 + $0x174] sm:$0xf0]  ;;  %v2098_v8 = vor.u32 %v2438_v0, %v2097_v63  ;;  %v2163_v46 = vld [vmem:[#allocation8 + $0x3b8] sm:$0xf0] }
  0xb8   :  { %v1970_v7 = vor.u32 %v2406_v62, %v1969_v61  ;;  %v1747_v51 = vld [vmem:[#allocation8 + $0x78] sm:$0xf0]  ;;  %v2396_v52 = vld [vmem:[#allocation8 + $0x1ec] sm:$0xf] }
  0xb9   :  { %v255_v15 = vmax.f32 %v225_v10, 0.0  ;;  %1171 = vmatpush.bf16.msrb.mxu2 %v2050_v2  ;;  %v1890_v2 = vor.u32 %v2386_v54, %v1889_v53  ;;  %v1953_v10 = vld [vmem:[#allocation8 + $0x208] sm:$0xf]  ;;  %v1939_v53 = vld [vmem:[#allocation8 + $0x1f8] sm:$0xf0] }
  0xba   :  { %1184 = vmatpush.bf16.msrb.mxu3 %v2178_v3  ;;  %1147 = vmatpush.bf16.msra.mxu0 %v1762_v6  ;;  %v1814_v3 = vor.u32 %v2364_v59, %v1811_v60  ;;  %v2360_v6 = vld [vmem:[#allocation8 + $0xcc] sm:$0xf]  ;;  %v2019_v60 = vld [vmem:[#allocation8 + $0x298] sm:$0xf0]  ;;  %v1942_v0 = vor.u32 %v2396_v52, %v1939_v53 }
  0xbb   :  { %v2825_v23 = vpack.c.bf16 %v255_v15, %v255_v15  ;;  %v1874_v15 = vor.u32 %v2382_v5, %v1873_v4  ;;  %v1798_v19 = vor.u32 %v2360_v6, %v1795_v9  ;;  %v2448_v61 = vld [vmem:[#allocation8 + $0x38c] sm:$0xf]  ;;  %v2147_v62 = vld [vmem:[#allocation8 + $0x398] sm:$0xf0] }
  0xbc   :  { %v1923_v4 = vld [vmem:[#allocation8 + $0x1d8] sm:$0xf0]  ;;  %v2150_v6 = vor.u32 %v2448_v61, %v2147_v62  ;;  %v2444_v9 = vld [vmem:[#allocation8 + $0x36c] sm:$0xf] }
  0xbd   :  { %1172 = vmatpush.bf16.msrb.mxu2 %v2034_v16  ;;  %1061 = vmatmul.bf16.vlgmr.msra.gmra.mxu1 %v2825_v23  ;;  %v2067_v16 = vld [vmem:[#allocation8 + $0x2f8] sm:$0xf0]  ;;  %v2468_v62 = vld [vmem:[#allocation11 + $0x28] sm:$0xff] }
  0xbe   :  { %1185 = vmatpush.bf16.msrb.mxu3 %v2162_v17  ;;  %1100 = vmatmul.bf16.vlgmr.msrb.gmra.mxu0 %v2816_v36  ;;  %v226_v33 = vpop.f32.mrf.mxu1  ;;  %v2460_v17 = vld [vmem:[#allocation8 + $0x3ec] sm:$0xf]  ;;  %v2070_v28 = vor.u32 %v2428_v14, %v2067_v16  ;;  %v1715_v14 = vld [vmem:[#allocation8 + $0x38] sm:$0xf0] }
  0xbf   :  { %1148 = vmatpush.bf16.msra.mxu0 %v1746_v24  ;;  %1157 = vmatpush.bf16.msra.mxu1 %v1938_v25  ;;  %v1954_v24 = vor.u32 %v2402_v11, %v1953_v10  ;;  %v2082_v25 = vor.u32 %v2434_v13, %v2081_v12  ;;  %v2198_v29 = vor.u32 %v2460_v17, %v2195_v18  ;;  %v2456_v33 = vld [vmem:[#allocation8 + $0x3cc] sm:$0xf]  ;;  %v2131_v10 = vld [vmem:[#allocation8 + $0x378] sm:$0xf0] }
  0xc0   :  { %v2182_v20 = vor.u32 %v2456_v33, %v2179_v34  ;;  %v2340_v13 = vld [vmem:[#allocation8 + $0x2c] sm:$0xf]  ;;  %v1907_v16 = vld [vmem:[#allocation8 + $0x1b8] sm:$0xf0]  ;;  %v2134_v18 = vor.u32 %v2444_v9, %v2131_v10  ;;  %v2485_v9 = vld [vmem:[#allocation11 + $0xb0] sm:$0xff] }
  0xc1   :  { %1173 = vmatpush.bf16.msrb.mxu2 %v2018_v30  ;;  %v2424_v30 = vld [vmem:[#allocation8 + $0x2cc] sm:$0xf]  ;;  %v1971_v34 = vld [vmem:[#allocation8 + $0x238] sm:$0xf0] }
  0xc2   :  { %1186 = vmatpush.bf16.msrb.mxu3 %v2146_v31  ;;  %v1858_v31 = vor.u32 %v2378_v22, %v1857_v21  ;;  %v2054_v41 = vor.u32 %v2424_v30, %v2051_v32  ;;  %v1987_v21 = vld [vmem:[#allocation8 + $0x258] sm:$0xf0]  ;;  %v2440_v22 = vld [vmem:[#allocation8 + $0x34c] sm:$0xf] }
  0xc3   :  { %1149 = vmatpush.bf16.msra.mxu0 %v1730_v38  ;;  %1158 = vmatpush.bf16.msra.mxu1 %v1922_v39  ;;  %v2374_v38 = vld [vmem:[#allocation8 + $0x134] sm:$0xf0]  ;;  %v2352_v39 = vld [vmem:[#allocation8 + $0x8c] sm:$0xf]  ;;  %v1891_v30 = vld [vmem:[#allocation8 + $0x198] sm:$0xf0] }
  0xc4   :  { %1126 = vmatmul.bf16.vlgmr.msra.gmra.mxu2 %v2819_v55  ;;  %v1766_v47 = vor.u32 %v2352_v39, %v1763_v40  ;;  %v2404_v33 = vld [vmem:[#allocation8 + $0x22c] sm:$0xf] }
  0xc5   :  { %1139 = vmatmul.bf16.vlgmr.msra.gmra.mxu3 %v2821_v56  ;;  %1174 = vmatpush.bf16.msrb.mxu2 %v2002_v43  ;;  %v1842_v43 = vor.u32 %v2374_v38, %v1841_v37  ;;  %v2099_v37 = vld [vmem:[#allocation8 + $0x338] sm:$0xf0]  ;;  %v2380_v40 = vld [vmem:[#allocation8 + $0x16c] sm:$0xf] }
  0xc6   :  { %1187 = vmatpush.bf16.msrb.mxu3 %v2130_v44  ;;  %v2035_v44 = vld [vmem:[#allocation8 + $0x2b8] sm:$0xf0]  ;;  %v2472_v10 = vld [vmem:[#allocation11 + $0x48] sm:$0xff] }
  0xc7   :  { %1150 = vmatpush.bf16.msra.mxu0 %v1714_v49  ;;  %1159 = vmatpush.bf16.msra.mxu1 %v1906_v50  ;;  %v2370_v49 = vld [vmem:[#allocation8 + $0x114] sm:$0xf0]  ;;  %v2348_v50 = vld [vmem:[#allocation8 + $0x6c] sm:$0xf]  ;;  %v2038_v54 = vor.u32 %v2420_v42, %v2035_v44  ;;  %v1974_v42 = vor.u32 %v2404_v33, %v1971_v34  ;;  %v2479_v33 = vld [vmem:[#allocation11 + $0x80] sm:$0xff] }
  0xc8   :  { %v1826_v59 = vor.u32 %v2370_v49, %v1825_v48  ;;  %v1750_v63 = vor.u32 %v2348_v50, %v1747_v51  ;;  %v2400_v44 = vld [vmem:[#allocation8 + $0x20c] sm:$0xf]  ;;  %v1859_v50 = vld [vmem:[#allocation8 + $0x158] sm:$0xf0] }
  0xc9   :  { %1175 = vmatpush.bf16.msrb.mxu2 %v1986_v57  ;;  %v2166_v57 = vor.u32 %v2452_v45, %v2163_v46  ;;  %v1955_v45 = vld [vmem:[#allocation8 + $0x218] sm:$0xf0]  ;;  %v2432_v46 = vld [vmem:[#allocation8 + $0x30c] sm:$0xf] }
  0xca   :  { %1188 = vmatpush.bf16.msrb.mxu3 %v2114_v58  ;;  %v2416_v58 = vld [vmem:[#allocation8 + $0x28c] sm:$0xf]  ;;  %v1958_v51 = vor.u32 %v2400_v44, %v1955_v45  ;;  %v2494_v34 = vld [vmem:[#allocation11 + $0xf8] sm:$0xff] }
  0xcb   :  { %1151 = vmatpush.bf16.msra.mxu0 %v1698_v1  ;;  %1160 = vmatpush.bf16.msra.mxu1 %v1890_v2  ;;  %v2344_v1 = vld [vmem:[#allocation8 + $0x4c] sm:$0xf]  ;;  %v1731_v2 = vld [vmem:[#allocation8 + $0x58] sm:$0xf0]  ;;  %v2022_v5 = vor.u32 %v2416_v58, %v2019_v60 }
  0xcc   :  { %v1734_v11 = vor.u32 %v2344_v1, %v1731_v2  ;;  %v2376_v49 = vld [vmem:[#allocation8 + $0x14c] sm:$0xf]  ;;  %v1827_v60 = vld [vmem:[#allocation8 + $0x118] sm:$0xf0]  ;;  %v2477_v2 = vld [vmem:[#allocation11 + $0x70] sm:$0xff] }
  0xcd   :  { %1176 = vmatpush.bf16.msrb.mxu2 %v1970_v7  ;;  %1113 = vmatmul.bf16.vlgmr.msrb.gmra.mxu1 %v2825_v23  ;;  %v2412_v7 = vld [vmem:[#allocation8 + $0x26c] sm:$0xf]  ;;  %v1862_v53 = vor.u32 %v2376_v49, %v1859_v50  ;;  %v2478_v1 = vld [vmem:[#allocation11 + $0x78] sm:$0xff] }
  0xce   :  { %1189 = vmatpush.bf16.msrb.mxu3 %v2098_v8  ;;  %1152 = vmatmul.bf16.vlgmr.msra.gmra.mxu0 %v2816_v36  ;;  %v2003_v8 = vld [vmem:[#allocation8 + $0x278] sm:$0xf0] }
  0xcf   :  { %1196 = vmatpush.bf16.msrb.mxu0 %v1814_v3  ;;  %1161 = vmatpush.bf16.msra.mxu1 %v1874_v15  ;;  %v2392_v3 = vld [vmem:[#allocation8 + $0x1cc] sm:$0xf]  ;;  %v2006_v17 = vor.u32 %v2412_v7, %v2003_v8  ;;  %v2473_v8 = vld [vmem:[#allocation11 + $0x50] sm:$0xff] }
  0xd0   :  { %v1926_v12 = vor.u32 %v2392_v3, %v1923_v4  ;;  %v2388_v15 = vld [vmem:[#allocation8 + $0x1ac] sm:$0xf]  ;;  %v2463_v4 = vld [vmem:[#allocation11] sm:$0xff] }
  0xd1   :  { %1177 = vmatpush.bf16.msrb.mxu2 %v1954_v24  ;;  %v2115_v24 = vld [vmem:[#allocation8 + $0x358] sm:$0xf0]  ;;  %v1910_v26 = vor.u32 %v2388_v15, %v1907_v16  ;;  %v2476_v3 = vld [vmem:[#allocation11 + $0x68] sm:$0xff]  ;;  %v2840_v15 = vld [vmem:[#allocation10] sm:$0xf] }
  0xd2   :  { %1190 = vmatpush.bf16.msrb.mxu3 %v2082_v25  ;;  %v1718_v25 = vor.u32 %v2340_v13, %v1715_v14  ;;  %v2118_v32 = vor.u32 %v2440_v22, %v2115_v24  ;;  %v2471_v13 = vld [vmem:[#allocation11 + $0x40] sm:$0xff]  ;;  %v392_v16 = vperm.slane %v2840_v15, 0  ;;  %v2481_v22 = vld [vmem:[#allocation11 + $0x90] sm:$0xff] }
  0xd3   :  { %1197 = vmatpush.bf16.msrb.mxu0 %v1798_v19  ;;  %1162 = vmatpush.bf16.msra.mxu1 %v1858_v31  ;;  %v2408_v19 = vld [vmem:[#allocation8 + $0x24c] sm:$0xf]  ;;  %v2483_v14 = vld [vmem:[#allocation11 + $0xa0] sm:$0xff] }
  0xd4   :  { %1178 = vmatmul.bf16.vlgmr.msrb.gmra.mxu2 %v2819_v55  ;;  %v1990_v31 = vor.u32 %v2408_v19, %v1987_v21 }
  0xd5   :  { %1222 = vmatpush.bf16.msra.mxu2 %v2070_v28  ;;  %1191 = vmatmul.bf16.vlgmr.msrb.gmra.mxu3 %v2821_v56  ;;  %v1699_v28 = vld [vmem:[#allocation8 + $0x18] sm:$0xf0] }
  0xd6   :  { %1235 = vmatpush.bf16.msra.mxu3 %v2198_v29  ;;  %v2384_v29 = vld [vmem:[#allocation8 + $0x18c] sm:$0xf]  ;;  %v1702_v38 = vor.u32 %v2336_v27, %v1699_v28 }
  0xd7   :  { %1198 = vmatpush.bf16.msrb.mxu0 %v1782_v35  ;;  %1163 = vmatpush.bf16.msra.mxu1 %v1842_v43  ;;  %v2436_v35 = vld [vmem:[#allocation8 + $0x32c] sm:$0xf]  ;;  %v1894_v39 = vor.u32 %v2384_v29, %v1891_v30 }
  0xd8   :  { %v2102_v43 = vor.u32 %v2436_v35, %v2099_v37  ;;  %v2480_v28 = vld [vmem:[#allocation11 + $0x88] sm:$0xff] }
  0xd9   :  { %1223 = vmatpush.bf16.msra.mxu2 %v2054_v41  ;;  %v1875_v41 = vld [vmem:[#allocation8 + $0x178] sm:$0xf0] }
  0xda   :  { %1236 = vmatpush.bf16.msra.mxu3 %v2182_v20  ;;  %v2470_v20 = vld [vmem:[#allocation11 + $0x38] sm:$0xff]  ;;  %v1878_v48 = vor.u32 %v2380_v40, %v1875_v41  ;;  %v2493_v40 = vld [vmem:[#allocation11 + $0xf0] sm:$0xff] }
  0xdb   :  { %1199 = vmatpush.bf16.msrb.mxu0 %v1766_v47  ;;  %1164 = vmatpush.bf16.msra.mxu1 %v1826_v59  ;;  %v2083_v47 = vld [vmem:[#allocation8 + $0x318] sm:$0xf0]  ;;  %v2368_v59 = vld [vmem:[#allocation8 + $0x10c] sm:$0xf] }
  0xdc   :  { %v2086_v52 = vor.u32 %v2432_v46, %v2083_v47  ;;  %v1830_v61 = vor.u32 %v2368_v59, %v1827_v60  ;;  %v2489_v59 = vld [vmem:[#allocation11 + $0xd0] sm:$0xff]  ;;  %v394_v60 = vperm.slane %v2840_v15, 2 }
  0xdd   :  { %1224 = vmatpush.bf16.msra.mxu2 %v2038_v54  ;;  %v2372_v54 = vld [vmem:[#allocation8 + $0x12c] sm:$0xf] }
  0xde   :  { %1237 = vmatpush.bf16.msra.mxu3 %v2166_v57  ;;  %1165 = vmatmul.bf16.vlgmr.msra.gmra.mxu1 %v2825_v23  ;;  %v1843_v57 = vld [vmem:[#allocation8 + $0x138] sm:$0xf0] }
  0xdf   :  { %1200 = vmatpush.bf16.msrb.mxu0 %v1750_v63  ;;  %1209 = vmatpush.bf16.msrb.mxu1 %v1942_v0  ;;  %v1846_v58 = vor.u32 %v2372_v54, %v1843_v57  ;;  %v2467_v63 = vld [vmem:[#allocation11 + $0x20] sm:$0xff]  ;;  %v2466_v0 = vld [vmem:[#allocation11 + $0x18] sm:$0xff] }
  0xe1   :  { %1225 = vmatpush.bf16.msra.mxu2 %v2022_v5  ;;  %v2474_v5 = vld [vmem:[#allocation11 + $0x58] sm:$0xff] }
  0xe2   :  { %1238 = vmatpush.bf16.msra.mxu3 %v2150_v6  ;;  %v2486_v6 = vld [vmem:[#allocation11 + $0xb8] sm:$0xff] }
  0xe3   :  { %1201 = vmatpush.bf16.msrb.mxu0 %v1734_v11  ;;  %1210 = vmatpush.bf16.msrb.mxu1 %v1926_v12  ;;  %v2484_v11 = vld [vmem:[#allocation11 + $0xa8] sm:$0xff] }
  0xe5   :  { %1226 = vmatpush.bf16.msra.mxu2 %v2006_v17  ;;  %v2482_v17 = vld [vmem:[#allocation11 + $0x98] sm:$0xff] }
  0xe6   :  { %1239 = vmatpush.bf16.msra.mxu3 %v2134_v18 }
  0xe7   :  { %1202 = vmatpush.bf16.msrb.mxu0 %v1718_v25  ;;  %1211 = vmatpush.bf16.msrb.mxu1 %v1910_v26 }
  0xe9   :  { %1227 = vmatpush.bf16.msra.mxu2 %v1990_v31 }
  0xea   :  { %1240 = vmatpush.bf16.msra.mxu3 %v2118_v32 }
  0xeb   :  { %1203 = vmatpush.bf16.msrb.mxu0 %v1702_v38  ;;  %1212 = vmatpush.bf16.msrb.mxu1 %v1894_v39  ;;  %v393_v39 = vperm.slane %v2840_v15, 1 }
  0xed   :  { %1228 = vmatpush.bf16.msra.mxu2 %v1974_v42  ;;  %v2492_v42 = vld [vmem:[#allocation11 + $0xe8] sm:$0xff] }
  0xee   :  { %1241 = vmatpush.bf16.msra.mxu3 %v2102_v43  ;;  %1204 = vmatmul.bf16.vlgmr.msrb.gmra.mxu0 %v2816_v36  ;;  %v2469_v36 = vld [vmem:[#allocation11 + $0x30] sm:$0xff] }
  0xef   :  { %1516 = vmatpush.bf16.msra.mxu0 %v2470_v20  ;;  %1213 = vmatpush.bf16.msrb.mxu1 %v1878_v48  ;;  %v2491_v48 = vld [vmem:[#allocation11 + $0xe0] sm:$0xff] }
  0xf1   :  { %1229 = vmatpush.bf16.msra.mxu2 %v1958_v51 }
  0xf2   :  { %1242 = vmatpush.bf16.msra.mxu3 %v2086_v52 }
  0xf3   :  { %1214 = vmatpush.bf16.msrb.mxu1 %v1862_v53  ;;  %1517 = vmatpush.bf16.msra.mxu0 %v2469_v36  ;;  %v2490_v53 = vld [vmem:[#allocation11 + $0xd8] sm:$0xff] }
  0xf4   :  { %1230 = vmatmul.bf16.vlgmr.msra.gmra.mxu2 %v2819_v55  ;;  %v2465_v55 = vld [vmem:[#allocation11 + $0x10] sm:$0xff] }
  0xf5   :  { %1243 = vmatmul.bf16.vlgmr.msra.gmra.mxu3 %v2821_v56  ;;  %v2464_v56 = vld [vmem:[#allocation11 + $0x8] sm:$0xff]  ;;  %1542 = vmatpush.bf16.msrb.mxu2 %v2486_v6 }
  0xf6   :  { %1555 = vmatpush.bf16.msrb.mxu3 %v2494_v34  ;;  %v1588_v34 = vld [vmem:[#allocation13 + $0x58] sm:$0xff] }
  0xf7   :  { %1215 = vmatpush.bf16.msrb.mxu1 %v1846_v58  ;;  %1518 = vmatpush.bf16.msra.mxu0 %v2468_v62  ;;  %v2488_v62 = vld [vmem:[#allocation11 + $0xc8] sm:$0xff] }
  0xf9   :  { %1543 = vmatpush.bf16.msrb.mxu2 %v2485_v9  ;;  %v395_v9 = vperm.slane %v2840_v15, 3  ;;  %v1591_v15 = vld [vmem:[#allocation13 + $0x70] sm:$0xff] }
  0xfa   :  { %1556 = vmatpush.bf16.msrb.mxu3 %v2493_v40  ;;  %v2509_v40 = vld [vmem:[%s2867_s6] ss:$0 sm:$0xff] }
  0xfb   :  { %1216 = vmatpush.bf16.msrb.mxu1 %v1830_v61  ;;  %1519 = vmatpush.bf16.msra.mxu0 %v2467_v63 }
  0xfd   :  { %1544 = vmatpush.bf16.msrb.mxu2 %v2484_v11 }
  0xfe   :  { %1217 = vmatmul.bf16.vlgmr.msrb.gmra.mxu1 %v2825_v23  ;;  %v2475_v23 = vld [vmem:[#allocation11 + $0x60] sm:$0xff]  ;;  %1557 = vmatpush.bf16.msrb.mxu3 %v2492_v42 }
  0xff   :  { %1520 = vmatpush.bf16.msra.mxu0 %v2466_v0  ;;  %1529 = vmatpush.bf16.msra.mxu1 %v2478_v1 }
 0x101   :  { %1545 = vmatpush.bf16.msrb.mxu2 %v2483_v14 }
 0x102   :  { %1558 = vmatpush.bf16.msrb.mxu3 %v2491_v48 }
 0x103   :  { %1521 = vmatpush.bf16.msra.mxu0 %v2465_v55  ;;  %1530 = vmatpush.bf16.msra.mxu1 %v2477_v2  ;;  %v2487_v55 = vld [vmem:[#allocation11 + $0xc0] sm:$0xff] }
 0x105   :  { %1546 = vmatpush.bf16.msrb.mxu2 %v2482_v17 }
 0x106   :  { %1559 = vmatpush.bf16.msrb.mxu3 %v2490_v53  ;;  %v1579_v53 = vld [vmem:[#allocation13 + $0x10] sm:$0xff] }
 0x107   :  { %1522 = vmatpush.bf16.msra.mxu0 %v2464_v56  ;;  %1531 = vmatpush.bf16.msra.mxu1 %v2476_v3 }
 0x109   :  { %1547 = vmatpush.bf16.msrb.mxu2 %v2481_v22 }
 0x10a   :  { %1560 = vmatpush.bf16.msrb.mxu3 %v2489_v59 }
 0x10b   :  { %1523 = vmatpush.bf16.msra.mxu0 %v2463_v4  ;;  %1532 = vmatpush.bf16.msra.mxu1 %v2475_v23 }
 0x10d   :  { %1548 = vmatpush.bf16.msrb.mxu2 %v2480_v28 }
 0x10e   :  { %1561 = vmatpush.bf16.msrb.mxu3 %v2488_v62 }
 0x10f   :  { %1533 = vmatpush.bf16.msra.mxu1 %v2474_v5 }
 0x111   :  { %1549 = vmatpush.bf16.msrb.mxu2 %v2479_v33  ;;  %v1589_v33 = vld [vmem:[#allocation13 + $0x60] sm:$0xff] }
 0x112   :  { %1562 = vmatpush.bf16.msrb.mxu3 %v2487_v55 }
 0x113   :  { %1534 = vmatpush.bf16.msra.mxu1 %v2473_v8 }
 0x117   :  { %1535 = vmatpush.bf16.msra.mxu1 %v2472_v10 }
 0x11b   :  { %1536 = vmatpush.bf16.msra.mxu1 %v2471_v13 }
 0x12a   :  { %v1049_v7 = vpop.f32.mrf.mxu0 }
 0x12b   :  { %v1050_v21 = vadd.f32 %v1049_v7, %v392_v16 }
 0x132   :  { %v1051_v12 = vpop.f32.mrf.mxu0 }
 0x137   :  { %v1075_v18 = vpop.f32.mrf.mxu2 }
 0x138   :  { %v1088_v19 = vpop.f32.mrf.mxu3 }
 0x13a   :  { %v1062_v24 = vpop.f32.mrf.mxu1 }
 0x13b   :  { %v1101_v25 = vpop.f32.mrf.mxu0  ;;  %v1063_v26 = vadd.f32 %v1062_v24, %v1050_v21 }
 0x13c   :  { %v1102_v43 = vadd.f32 %v1101_v25, %v393_v39  ;;  %v1584_v39 = vld [vmem:[#allocation13 + $0x38] sm:$0xff] }
 0x13d   :  { %v1076_v27 = vadd.f32 %v1075_v18, %v1063_v26 }
 0x13f   :  { %v1077_v29 = vpop.f32.mrf.mxu2  ;;  %v1089_v31 = vadd.f32 %v1088_v19, %v1076_v27 }
 0x140   :  { %v1090_v30 = vpop.f32.mrf.mxu3 }
 0x141   :  { %v1248_v32 = vmax.f32 %v1089_v31, 0.0  ;;  %v1592_v30 = vld [vmem:[#allocation13 + $0x78] sm:$0xff]  ;;  %v1590_v31 = vld [vmem:[#allocation13 + $0x68] sm:$0xff] }
 0x142   :  { %v1064_v35 = vpop.f32.mrf.mxu1  ;;  %1593 = vmatpush.msrb.mxu0 %v1592_v30 }
 0x143   :  { %v1103_v37 = vpop.f32.mrf.mxu0  ;;  %v1252_v38 = vpack.c.bf16 %v1248_v32, %v1248_v32  ;;  %v1587_v35 = vld [vmem:[#allocation13 + $0x50] sm:$0xff] }
 0x144   :  { %1594 = vmatpush.msrb.mxu0 %v1591_v15  ;;  %v1586_v37 = vld [vmem:[#allocation13 + $0x48] sm:$0xff] }
 0x145   :  { %1524 = vmatmul.bf16.vlgmr.msra.gmra.mxu0 %v1252_v38  ;;  %v1585_v38 = vld [vmem:[#allocation13 + $0x40] sm:$0xff] }
 0x146   :  { %1595 = vmatpush.msrb.mxu0 %v1590_v31 }
 0x147   :  { %v1127_v41 = vpop.f32.mrf.mxu2 }
 0x148   :  { %v1140_v20 = vpop.f32.mrf.mxu3  ;;  %1596 = vmatpush.msrb.mxu0 %v1589_v33 }
 0x14a   :  { %v1114_v44 = vpop.f32.mrf.mxu1  ;;  %1597 = vmatpush.msrb.mxu0 %v1588_v34 }
 0x14b   :  { %v1153_v45 = vpop.f32.mrf.mxu0  ;;  %v1115_v46 = vadd.f32 %v1114_v44, %v1102_v43 }
 0x14c   :  { %v1154_v63 = vadd.f32 %v1153_v45, %v394_v60  ;;  %1598 = vmatpush.msrb.mxu0 %v1587_v35 }
 0x14d   :  { %v1128_v47 = vadd.f32 %v1127_v41, %v1115_v46  ;;  %v1568_v41 = vlaneseq }
 0x14e   :  { %1599 = vmatpush.msrb.mxu0 %v1586_v37 }
 0x14f   :  { %v1129_v49 = vpop.f32.mrf.mxu2  ;;  %v1141_v51 = vadd.f32 %v1140_v20, %v1128_v47  ;;  %v1583_v20 = vld [vmem:[#allocation13 + $0x30] sm:$0xff]  ;;  %v1569_v43 = vand.u32 127, %v1568_v41 }
 0x150   :  { %v1142_v50 = vpop.f32.mrf.mxu3  ;;  %1600 = vmatpush.msrb.mxu0 %v1585_v38 }
 0x151   :  { %v1249_v52 = vmax.f32 %v1141_v51, 0.0  ;;  %vm1570_vm1 = vcmp.lt.s32.totalorder %v1569_v43, 13  ;;  %v1582_v50 = vld [vmem:[#allocation13 + $0x28] sm:$0xff]  ;;  %v1581_v51 = vld [vmem:[#allocation13 + $0x20] sm:$0xff] }
 0x152   :  { %v1116_v54 = vpop.f32.mrf.mxu1  ;;  %1601 = vmatpush.msrb.mxu0 %v1584_v39 }
 0x153   :  { %v1155_v57 = vpop.f32.mrf.mxu0  ;;  %v1253_v58 = vpack.c.bf16 %v1249_v52, %v1249_v52  ;;  %v1580_v52 = vld [vmem:[#allocation13 + $0x18] sm:$0xff]  ;;  %v1578_v54 = vld [vmem:[#allocation13 + $0x8] sm:$0xff] }
 0x154   :  { %1602 = vmatpush.msrb.mxu0 %v1583_v20  ;;  %v1577_v57 = vld [vmem:[#allocation13] sm:$0xff] }
 0x155   :  { %1537 = vmatmul.bf16.vlgmr.msra.gmra.mxu1 %v1253_v58 }
 0x156   :  { %1603 = vmatpush.msrb.mxu0 %v1582_v50 }
 0x157   :  { %v1179_v61 = vpop.f32.mrf.mxu2 }
 0x158   :  { %v1192_v36 = vpop.f32.mrf.mxu3  ;;  %1604 = vmatpush.msrb.mxu0 %v1581_v51 }
 0x15a   :  { %1605 = vmatpush.msrb.mxu0 %v1580_v52 }
 0x15b   :  { %v1166_v0 = vpop.f32.mrf.mxu1 }
 0x15c   :  { %v1167_v1 = vadd.f32 %v1166_v0, %v1154_v63  ;;  %1606 = vmatpush.msrb.mxu0 %v1579_v53  ;;  %v1619_v63 = vld [vmem:[%s2869_s8] sm:$0xf] }
 0x15d   :  { %v1620_v55 = vunpack.c.l.bf16 %v1619_v63 }
 0x15e   :  { %v1180_v2 = vadd.f32 %v1179_v61, %v1167_v1  ;;  %1607 = vmatpush.msrb.mxu0 %v1578_v54 }
 0x15f   :  { %v1181_v56 = vpop.f32.mrf.mxu2 }
 0x160   :  { %v1194_v3 = vpop.f32.mrf.mxu3  ;;  %v1193_v4 = vadd.f32 %v1192_v36, %v1180_v2  ;;  %1608 = vmatpush.msrb.mxu0 %v1577_v57 }
 0x162   :  { %v1250_v23 = vmax.f32 %v1193_v4, 0.0 }
 0x163   :  { %v1168_v5 = vpop.f32.mrf.mxu1 }
 0x164   :  { %v1254_v6 = vpack.c.bf16 %v1250_v23, %v1250_v23 }
 0x166   :  { %1550 = vmatmul.bf16.vlgmr.msrb.gmra.mxu2 %v1254_v6 }
 0x16b   :  { %v1205_v7 = vpop.f32.mrf.mxu0 }
 0x16c   :  { %v1206_v12 = vadd.f32 %v1205_v7, %v395_v9 }
 0x173   :  { %v1207_v8 = vpop.f32.mrf.mxu0 }
 0x177   :  { %v1231_v10 = vpop.f32.mrf.mxu2 }
 0x178   :  { %v1244_v11 = vpop.f32.mrf.mxu3 }
 0x17b   :  { %v1218_v13 = vpop.f32.mrf.mxu1 }
 0x17c   :  { %v1219_v14 = vadd.f32 %v1218_v13, %v1206_v12 }
 0x17e   :  { %v1232_v16 = vadd.f32 %v1231_v10, %v1219_v14 }
 0x17f   :  { %v1233_v17 = vpop.f32.mrf.mxu2 }
 0x180   :  { %v1246_v18 = vpop.f32.mrf.mxu3  ;;  %v1245_v19 = vadd.f32 %v1244_v11, %v1232_v16 }
 0x182   :  { %v1251_v21 = vmax.f32 %v1245_v19, 0.0 }
 0x183   :  { %v1220_v22 = vpop.f32.mrf.mxu1 }
 0x184   :  { %v1255_v24 = vpack.c.bf16 %v1251_v21, %v1251_v21 }
 0x186   :  { %1563 = vmatmul.bf16.vlgmr.msrb.gmra.mxu3 %v1255_v24 }
 0x1c2   :  { %v1525_v25 = vpop.f32.mrf.mxu0 }
 0x1c3   :  { %v1526_v42 = vadd.f32 %v2509_v40, %v1525_v25 }
 0x1ca   :  { %v1527_v26 = vpop.f32.mrf.mxu0 }
 0x1d2   :  { %v1538_v27 = vpop.f32.mrf.mxu1 }
 0x1d3   :  { %v1539_v44 = vadd.f32 %v1538_v27, %v1526_v42 }
 0x1da   :  { %v1540_v28 = vpop.f32.mrf.mxu1 }
 0x1e9   :  { %v1551_v29 = vpop.f32.mrf.mxu2 }
 0x1ea   :  { %v1552_v45 = vadd.f32 %v1551_v29, %v1539_v44 }
 0x1f1   :  { %v1553_v32 = vpop.f32.mrf.mxu2 }
 0x209   :  { %v1564_v46 = vpop.f32.mrf.mxu3 }
 0x20a   :  { %v1565_v47 = vadd.f32 %v1564_v46, %v1552_v45 }
 0x20c   :  { %v1571_v48 = vsel %vm1570_vm1, %v1565_v47, -1e+30 }
 0x20d   :  { %1572 = vmax.xlane.f32.xlu0 %v1571_v48 }
 0x211   :  { %v1566_v49 = vpop.f32.mrf.mxu3 }
 0x280   :  { %v1573_v58 = vpop.xlane.xlu0 %1572 }
 0x281   :  { %v1574_v59 = vsub.f32 %v1571_v48, %v1573_v58 }
 0x283   :  { %v1575_v60 = vmul.f32 1.442695, %v1574_v59 }
 0x285   :  { %2510 = vpow2.f32 %v1575_v60 }
 0x28b   :  { %v2511_v61 = vpop.eup %2510 }
 0x28c   :  { %1609 = vmatmul.f32.vlgmr.msrb.gmra.mxu0 %v2511_v61 }
 0x309   :  { %v1610_v36 = vpop.f32.mrf.mxu0 }
 0x30a   :  { %v1613_v62 = vsel %vm1570_vm1, %v1610_v36, 1.0 }
 0x30b   :  { %2512 = vlog2.f32 %v1613_v62 }
 0x311   :  { %v2513_v0 = vpop.eup %2512 }
 0x312   :  { %v1615_v1 = vmul.f32 0.6931472, %v2513_v0 }
 0x314   :  { %v1616_v2 = vsub.f32 %v1574_v59, %v1615_v1 }
 0x316   :  { %v1617_v56 = vsel %vm1570_vm1, %v1616_v2, 0.0 }
 0x317   :  { %v1621_v3 = vmul.f32 %v1620_v55, %v1617_v56  ;;  %1618 = vst [vmem:[#allocation14] sm:$0xff] %v1617_v56 }
 0x318   :  { %1637 = dma.vmem_to_hbm [thread:$0]  %s1633_s30, 128, %s1635_s12, [#allocation4]  }
 0x319   :  { %1622 = vadd.xlane.f32.xlu0 %v1621_v3 }
 0x38c   :  { %v1623_v4 = vpop.xlane.xlu0 %1622 }
 0x38d   :  { %v1624_v23 = vsub.f32 0.0, %v1623_v4 }
 0x38f   :  { %1626 = vst.msk [vmem:[%s2871_s10] sm:$0xff] %vm1625_vm2, %v1624_v23 }
 0x390   :  { %2714 = dma.done.wait [#allocation4], 128  }
 0x391   :  { %2715 = vsyncadd [#allocation4], 4294967168 }
 0x392   :  { %1646 = vsyncpa [#allocation3], 1 }
 0x393   :  { %1647 = vsyncpa [#allocation6], 1 }
 0x394   :  { %1648 = vsyncpa [#allocation9], 1 }
 0x395   :  { %1649 = vsyncpa [#allocation12], 1 }
 0x396   :  { %1650 = vsyncpa [#allocation4], 1 }

</bundles_post_ra>
